<compile_context>
chip_gen: v7x
topology: tpu7x:2x2x1
jax: 0.10.0
libtpu: 0.0.40
codegen_flags: <defaults>
</compile_context>

<pallas_src>
import functools
import math

import jax
import jax.numpy as jnp
from jax.experimental import pallas as pl
from jax.experimental.pallas import tpu as pltpu


def _gelu(v):
    # Numerics-policy decision: tanh GELU instead of exact erf GELU (the
    # reference nn.GELU()).  Max abs deviation ~3e-4, well inside the 3e-2
    # bf16 tolerance, and it runs on the otherwise-idle EUP slot.
    return jax.nn.gelu(v, approximate=True)


def _round_up(n, m):
    return ((n + m - 1) // m) * m


def _tpu_vmem_capacity_bytes():
    try:
        return int(pltpu.get_tpu_info().vmem_capacity_bytes)
    except Exception:
        return 64 * 1024 * 1024  # conservative fallback: safe on every generation


# --------------------------------- kernel ------------------------------------
def block_kernel(x_ref, xcls_ref, mask_ref,
                 wq_ref, wkv_ref, wo_ref, w1c_ref, w1_ref, w2_ref, hselT_ref,
                 bq_ref, bkv_ref, bo_ref, b1c_ref, b1_ref, b2_ref,
                 o_ref, *, scale):
    """One grid step == TB batch elements.  Weights are pre-transposed,
    zero-padded bf16; every linear layer is a plain `a @ W` MXU matmul with f32
    accumulation and an f32 bias added on the result slab."""
    f32, bf16 = jnp.float32, jnp.bfloat16

    x3 = x_ref[...]                                     # (TB, S, Ep) f32, residual
    TB, S, Ep = x3.shape
    x3_bf = x3.astype(bf16)                             # single bf16 copy for matmuls
    xf_bf = x3_bf.reshape(TB * S, Ep)
    xc_bf = xcls_ref[...].reshape(TB, Ep).astype(bf16)
    mask = mask_ref[...]                                # (TB, 1, S) additive bias, f32
    hselT = hselT_ref[...]                              # (Hh, Ep) 0/1 head selector, bf16

    # ---- projections: q from class token, fused k|v from x -------------------
    q = jnp.dot(xc_bf, wq_ref[...], preferred_element_type=f32) + bq_ref[...]
    q = q * scale                                                           # (TB, Ep)
    kv = (jnp.dot(xf_bf, wkv_ref[...], preferred_element_type=f32)
          + bkv_ref[...]).astype(bf16)                                      # (TB*S, 2Ep)
    k3 = kv[:, :Ep].reshape(TB, S, Ep)
    v3 = kv[:, Ep:].reshape(TB, S, Ep)

    # ---- attention (single query per batch element), lane-dense softmax ------
    # qh[b, h, :] is q with every lane outside head h zeroed, so the batched
    # matmul against k reduces over exactly that head's Dh lanes.
    qh = q.astype(bf16)[:, None, :] * hselT[None, :, :]                     # (TB, Hh, Ep)
    scores = jnp.einsum("bhe,bse->bhs", qh, k3,
                        preferred_element_type=f32) + mask                  # (TB, Hh, S)
    m = jnp.max(scores, axis=-1, keepdims=True)
    e = jnp.exp(scores - m)
    p = e * pl.reciprocal(jnp.sum(e, axis=-1, keepdims=True), approx=True)  # (TB, Hh, S)

    ctx_h = jnp.einsum("bhs,bse->bhe", p.astype(bf16), v3,
                       preferred_element_type=f32)                          # (TB, Hh, Ep)
    ctx = jnp.sum(ctx_h * hselT[None, :, :], axis=1)                        # (TB, Ep)

    attn = jnp.dot(ctx.astype(bf16), wo_ref[...],
                   preferred_element_type=f32) + bo_ref[...]                # (TB, Ep)

    # ---- class-token MLP (dropout == identity in eval) ------------------------
    hcls = _gelu(jnp.dot(attn.astype(bf16), w1c_ref[...],
                         preferred_element_type=f32) + b1c_ref[...])        # (TB, Hp)
    xcls2 = jnp.dot(hcls.astype(bf16), w2_ref[...],
                    preferred_element_type=f32) + b2_ref[...]               # (TB, Ep)

    # ---- token MLP with residual ----------------------------------------------
    # TODO(synk): at production Hp on v7x (64 MiB VMEM), chunk this MLP along
    # the hidden dim (accumulate y in f32 scratch) instead of shrinking TB.
    xa_bf = (x3_bf + xcls2.astype(bf16)[:, None, :]).reshape(TB * S, Ep)
    hh = _gelu(jnp.dot(xa_bf, w1_ref[...],
                       preferred_element_type=f32) + b1_ref[...])           # (TB*S, Hp)
    y = jnp.dot(hh.astype(bf16), w2_ref[...],
                preferred_element_type=f32) + b2_ref[...]                   # (TB*S, Ep)

    o_ref[...] = (y.reshape(TB, S, Ep) + x3).astype(o_ref.dtype)


# --------------------------- per-model weight prep ----------------------------
_WEIGHT_ORDER = ("wq", "wkv", "wo", "w1c", "w1", "w2", "hselT",
                 "bq", "bkv", "bo", "b1c", "b1", "b2")


def prepare_block_params(params, num_heads):
    """Transpose/pad/cast the weights once per model (hoisted out of the
    per-call path): padded bf16 weights, f32 biases, bf16 0/1 head selector."""
    E = params["wq"].shape[0]
    H = params["w1"].shape[0]
    assert E % num_heads == 0
    Dh = E // num_heads
    Ep = _round_up(E, 128)          # lane-dense activations / unmasked output stores
    Hp = _round_up(H, 128)
    Hh = _round_up(num_heads, 8)    # sublane-friendly head dimension
    f32, bf16 = jnp.float32, jnp.bfloat16

    def pad2(a, r, c):
        return jnp.pad(a, ((0, r - a.shape[0]), (0, c - a.shape[1])))

    def pad1(a, n):
        return jnp.pad(a, (0, n - a.shape[0]))

    # Pre-transposed (in-features-first), zero-padded bf16 weights for the MXU.
    wq = pad2(params["wq"].T, Ep, Ep).astype(bf16)
    wkv = jnp.concatenate([pad2(params["wk"].T, Ep, Ep),
                           pad2(params["wv"].T, Ep, Ep)], axis=1).astype(bf16)
    wo = pad2(params["wo"].T, Ep, Ep).astype(bf16)
    w1c = pad2(params["w1c"].T, Ep, Hp).astype(bf16)
    w1 = pad2(params["w1"].T, Ep, Hp).astype(bf16)
    w2 = pad2(params["w2"].T, Hp, Ep).astype(bf16)

    # Biases stay f32 (added onto the f32 matmul accumulators).
    bq = pad1(params["bq"], Ep).reshape(1, Ep).astype(f32)
    bkv = jnp.concatenate([pad1(params["bk"], Ep),
                           pad1(params["bv"], Ep)]).reshape(1, 2 * Ep).astype(f32)
    bo = pad1(params["bo"], Ep).reshape(1, Ep).astype(f32)
    b1c = pad1(params["b1c"], Hp).reshape(1, Hp).astype(f32)
    b1 = pad1(params["b1"], Hp).reshape(1, Hp).astype(f32)
    b2 = pad1(params["b2"], Ep).reshape(1, Ep).astype(f32)

    # 0/1 head selector: hselT[h, e] = 1 iff embedding lane e belongs to head h.
    e_idx = jnp.arange(Ep)
    h_idx = jnp.arange(Hh)
    hselT = (((e_idx[None, :] // Dh) == h_idx[:, None])
             & (e_idx[None, :] < E)
             & (h_idx[:, None] < num_heads)).astype(bf16)          # (Hh, Ep)

    weights = dict(wq=wq, wkv=wkv, wo=wo, w1c=w1c, w1=w1, w2=w2, hselT=hselT,
                   bq=bq, bkv=bkv, bo=bo, b1c=b1c, b1=b1, b2=b2)
    meta = dict(E=E, H=H, Ep=Ep, Hp=Hp, Hh=Hh, Dh=Dh, num_heads=num_heads)
    return dict(weights=weights, meta=meta)


# --------------------------------- forward ------------------------------------
def block_forward(x, x_cls, prep, src_key_padding_mask=None):
    """x: (B, S, E) f32, x_cls: (B, 1, E) f32, prep: prepare_block_params(...)."""
    meta = prep["meta"]
    weights = [prep["weights"][k] for k in _WEIGHT_ORDER]
    E, Ep, Hp, Hh, Dh = meta["E"], meta["Ep"], meta["Hp"], meta["Hh"], meta["Dh"]
    B, S, E_in = x.shape
    assert E_in == E

    f32 = jnp.float32
    weight_bytes = sum(int(w.size) * w.dtype.itemsize for w in weights)

    # ---- per-generation VMEM budget & batch-block size ------------------------
    vmem_cap = _tpu_vmem_capacity_bytes()
    vmem_budget = vmem_cap - max(8 << 20, vmem_cap // 8)   # ~56 MiB v7x, ~112 MiB v5e/v6e

    def vmem_estimate(tb, weight_buffers):
        # pipelined blocks (double-buffered): x, out, x_cls, mask
        pipelined = 2 * ((2 * tb * S * Ep + tb * Ep + tb * S) * 4)
        # in-kernel temporaries: kv(f32+bf16), hh(f32+bf16), y(f32), x3_bf, xa_bf,
        # qh/ctx_h, scores/e/p
        temps = tb * S * (2 * Ep * (4 + 2) + Hp * (4 + 2) + Ep * (4 + 2 + 2))
        temps += tb * Hh * (Ep * (4 + 2) + 3 * S * 4)
        return weight_buffers * weight_bytes + pipelined + temps

    # Target ~512 MXU rows per grid step (amortize the ~0.35us/step overhead and
    # keep the 256-deep MXU fed), bounded by the VMEM budget.  Batch is padded
    # to a multiple of tb, so no "tb must divide B" collapse.
    tb = max(1, min(B, max(1, 512 // S)))
    while tb > 1 and vmem_estimate(tb, weight_buffers=2) > vmem_budget:
        tb -= 1
    # v7x (<=64 MiB VMEM, 2 TensorCores): keep >=2 grid steps so the "parallel"
    # batch axis can shard across both cores, but only while each step still
    # feeds >=256 MXU rows.  Single-core v5e/v6e: skip (per-step overhead only).
    if vmem_cap <= (64 << 20) and pl.cdiv(B, tb) < 2 and tb >= 2 and (tb // 2) * S >= 256:
        tb //= 2

    Bp = pl.cdiv(B, tb) * tb
    grid_steps = Bp // tb

    # ---- lane-dense, zero-padded activations ----------------------------------
    # TODO(synk): when chaining Blocks, keep activations Ep-padded between layers
    # so this pad and the final [..., :E] slice happen once per network.
    xp = x.astype(f32) if Ep == E else jnp.pad(x, ((0, 0), (0, 0), (0, Ep - E))).astype(f32)
    xcp = x_cls.astype(f32) if Ep == E else jnp.pad(
        x_cls, ((0, 0), (0, 0), (0, Ep - E))).astype(f32)
    if src_key_padding_mask is None:
        mask_bias = jnp.zeros((B, 1, S), f32)
    else:
        mask_bias = jnp.where(src_key_padding_mask, -1e30, 0.0).astype(f32).reshape(B, 1, S)
    if Bp != B:
        xp = jnp.pad(xp, ((0, Bp - B), (0, 0), (0, 0)))
        xcp = jnp.pad(xcp, ((0, Bp - B), (0, 0), (0, 0)))
        mask_bias = jnp.pad(mask_bias, ((0, Bp - B), (0, 0), (0, 0)))

    # ---- cost estimate & VMEM limit --------------------------------------------
    flops = (2 * Bp * S * Ep * 2 * Ep          # fused k|v projection
             + 2 * 2 * Bp * Ep * Ep            # q + out projections
             + 2 * 2 * Bp * Ep * Hp            # class-token MLP
             + 2 * 2 * Bp * S * Ep * Hp        # token MLP
             + 2 * 2 * Bp * Hh * S * Ep)       # attention scores + weighted sum
    transcendentals = Bp * Hh * S + Bp * (S + 1) * Hp
    bytes_accessed = weight_bytes + (2 * Bp * S * Ep + Bp * Ep + Bp * S) * 4
    cost = pl.CostEstimate(flops=flops, transcendentals=transcendentals,
                           bytes_accessed=bytes_accessed)

    vmem_limit = int(min(vmem_budget,
                         max(32 << 20, 2 * vmem_estimate(tb, weight_buffers=2))))

    kernel = functools.partial(block_kernel, scale=1.0 / math.sqrt(Dh))

    def run(single_buffer_weights):
        # Constant-index-map weight blocks are only fetched once; a second
        # pipeline buffer is pure VMEM waste, so request a single buffer.
        w_kwargs = ({"pipeline_mode": pl.Buffered(1)} if single_buffer_weights else {})

        def const_spec(shape):
            n = len(shape)
            return pl.BlockSpec(shape, lambda b, _n=n: (0,) * _n, **w_kwargs)

        in_specs = [
            pl.BlockSpec((tb, S, Ep), lambda b: (b, 0, 0)),   # x
            pl.BlockSpec((tb, 1, Ep), lambda b: (b, 0, 0)),   # x_cls
            pl.BlockSpec((tb, 1, S), lambda b: (b, 0, 0)),    # key-padding additive bias
        ] + [const_spec(w.shape) for w in weights]
        out_spec = pl.BlockSpec((tb, S, Ep), lambda b: (b, 0, 0))

        out = pl.pallas_call(
            kernel,
            out_shape=jax.ShapeDtypeStruct((Bp, S, Ep), x.dtype),
            grid_spec=pltpu.PrefetchScalarGridSpec(
                num_scalar_prefetch=0,
                grid=(grid_steps,),
                in_specs=in_specs,
                out_specs=out_spec,
            ),
            compiler_params=pltpu.CompilerParams(
                dimension_semantics=("parallel",),
                vmem_limit_bytes=vmem_limit),
            cost_estimate=cost,
        )(xp, xcp, mask_bias, *weights)
        return jax.block_until_ready(out)

    try:
        out = run(single_buffer_weights=True)
    except Exception:
        # pl.Buffered(1) not supported by this jax/Mosaic build: fall back to
        # the default (double-buffered) constant weight blocks.
        out = run(single_buffer_weights=False)

    if Bp != B:
        out = out[:B]
    return out[..., :E] if Ep != E else out


# ------------------------------ pure-JAX reference ----------------------------
def block_ref(x, x_cls, p, num_heads, src_key_padding_mask=None):
    B, S, E = x.shape
    Dh = E // num_heads

    def lin(a, W, b):
        return a @ W.T + b

    q = lin(x_cls, p["wq"], p["bq"]).reshape(B, 1, num_heads, Dh).transpose(0, 2, 1, 3)
    k = lin(x, p["wk"], p["bk"]).reshape(B, S, num_heads, Dh).transpose(0, 2, 1, 3)
    v = lin(x, p["wv"], p["bv"]).reshape(B, S, num_heads, Dh).transpose(0, 2, 1, 3)
    s = jnp.einsum("bhqd,bhkd->bhqk", q, k) / math.sqrt(Dh)
    if src_key_padding_mask is not None:
        s = s + jnp.where(src_key_padding_mask, -1e30, 0.0)[:, None, None, :]
    a = jax.nn.softmax(s, axis=-1)
    o = jnp.einsum("bhqk,bhkd->bhqd", a, v).transpose(0, 2, 1, 3).reshape(B, 1, E)
    attn = lin(o, p["wo"], p["bo"])

    xcls = jax.nn.gelu(lin(attn, p["w1c"], p["b1c"]), approximate=False)
    xcls = lin(xcls, p["w2"], p["b2"])
    xx = x + xcls
    h = jax.nn.gelu(lin(xx, p["w1"], p["b1"]), approximate=False)
    y = lin(h, p["w2"], p["b2"])
    return y + x


def init_params(key, embed_dim, num_heads, hidden):
    ks = jax.random.split(key, 16)
    sd = 0.1
    E, H = embed_dim, hidden
    # MultiheadAttention in_proj (split), out_proj, plus fc1/fc2/fc1_cls.
    # (fc2_cls exists in __init__ but is unused in forward.)
    return {
        "wq": sd * jax.random.normal(ks[0], (E, E), jnp.float32),
        "bq": sd * jax.random.normal(ks[1], (E,), jnp.float32),
        "wk": sd * jax.random.normal(ks[2], (E, E), jnp.float32),
        "bk": sd * jax.random.normal(ks[3], (E,), jnp.float32),
        "wv": sd * jax.random.normal(ks[4], (E, E), jnp.float32),
        "bv": sd * jax.random.normal(ks[5], (E,), jnp.float32),
        "wo": sd * jax.random.normal(ks[6], (E, E), jnp.float32),
        "bo": sd * jax.random.normal(ks[7], (E,), jnp.float32),
        "w1c": sd * jax.random.normal(ks[8], (H, E), jnp.float32),
        "b1c": sd * jax.random.normal(ks[9], (H,), jnp.float32),
        "w1": sd * jax.random.normal(ks[10], (H, E), jnp.float32),
        "b1": sd * jax.random.normal(ks[11], (H,), jnp.float32),
        "w2": sd * jax.random.normal(ks[12], (E, H), jnp.float32),
        "b2": sd * jax.random.normal(ks[13], (E,), jnp.float32),
    }


if __name__ == "__main__":
    B, S, E, NUM_HEADS, HIDDEN = 2, 8, 32, 4, 64

    key = jax.random.PRNGKey(0)
    k_x, k_cls, k_p = jax.random.split(key, 3)
    x = jax.random.normal(k_x, (B, S, E), jnp.float32)
    x_cls = jax.random.normal(k_cls, (B, 1, E), jnp.float32)
    params = init_params(k_p, E, NUM_HEADS, HIDDEN)

    # Per-model weight prep (hoisted out of the per-call path).
    prep = prepare_block_params(params, NUM_HEADS)

    # bf16 matmuls (f32 accumulation) + tanh GELU => loosened tolerance vs. f32 ref.
    tol = dict(rtol=3e-2, atol=3e-2)

    # unmasked path
    out = jax.block_until_ready(block_forward(x, x_cls, prep))
    ref = jax.block_until_ready(block_ref(x, x_cls, params, NUM_HEADS))
    assert out.shape == (B, S, E)
    assert jnp.allclose(out, ref, **tol), float(jnp.max(jnp.abs(out - ref)))

    # masked path (key_padding_mask True => key is ignored)
    mask = jnp.zeros((B, S), bool).at[1, -2:].set(True)
    out_m = jax.block_until_ready(
        block_forward(x, x_cls, prep, src_key_padding_mask=mask))
    ref_m = jax.block_until_ready(
        block_ref(x, x_cls, params, NUM_HEADS, src_key_padding_mask=mask))
    assert jnp.allclose(out_m, ref_m, **tol), float(jnp.max(jnp.abs(out_m - ref_m)))

    print("KERNEL_OK")
</pallas_src>

<mosaic_0001>
module attributes {stable_mosaic.version = 11 : i64} {
  func.func @block_kernel(%arg0: i32, %arg1: memref<2x8x128xf32, #tpu.memory_space<vmem>>, %arg2: memref<2x1x128xf32, #tpu.memory_space<vmem>>, %arg3: memref<2x1x8xf32, #tpu.memory_space<vmem>>, %arg4: memref<128x128xbf16, #tpu.memory_space<vmem>>, %arg5: memref<128x256xbf16, #tpu.memory_space<vmem>>, %arg6: memref<128x128xbf16, #tpu.memory_space<vmem>>, %arg7: memref<128x128xbf16, #tpu.memory_space<vmem>>, %arg8: memref<128x128xbf16, #tpu.memory_space<vmem>>, %arg9: memref<128x128xbf16, #tpu.memory_space<vmem>>, %arg10: memref<8x128xbf16, #tpu.memory_space<vmem>>, %arg11: memref<1x128xf32, #tpu.memory_space<vmem>>, %arg12: memref<1x256xf32, #tpu.memory_space<vmem>>, %arg13: memref<1x128xf32, #tpu.memory_space<vmem>>, %arg14: memref<1x128xf32, #tpu.memory_space<vmem>>, %arg15: memref<1x128xf32, #tpu.memory_space<vmem>>, %arg16: memref<1x128xf32, #tpu.memory_space<vmem>>, %arg17: memref<2x8x128xf32, #tpu.memory_space<vmem>>) attributes {dimension_semantics = [#tpu.dimension_semantics<parallel>], iteration_bounds = array<i64: 1>, scalar_prefetch = 0 : i64, scratch_operands = 0 : i64, tpu.core_type = #tpu.core_type<tc>, window_params = [{transform_indices = @transform_0, window_bounds = array<i64: 2, 8, 128>}, {transform_indices = @transform_1, window_bounds = array<i64: 2, 1, 128>}, {transform_indices = @transform_2, window_bounds = array<i64: 2, 1, 8>}, {pipeline_mode = #tpu.pipeline_mode<synchronous>, transform_indices = @transform_3, window_bounds = array<i64: 128, 128>}, {pipeline_mode = #tpu.pipeline_mode<synchronous>, transform_indices = @transform_4, window_bounds = array<i64: 128, 256>}, {pipeline_mode = #tpu.pipeline_mode<synchronous>, transform_indices = @transform_5, window_bounds = array<i64: 128, 128>}, {pipeline_mode = #tpu.pipeline_mode<synchronous>, transform_indices = @transform_6, window_bounds = array<i64: 128, 128>}, {pipeline_mode = #tpu.pipeline_mode<synchronous>, transform_indices = @transform_7, window_bounds = array<i64: 128, 128>}, {pipeline_mode = #tpu.pipeline_mode<synchronous>, transform_indices = @transform_8, window_bounds = array<i64: 128, 128>}, {pipeline_mode = #tpu.pipeline_mode<synchronous>, transform_indices = @transform_9, window_bounds = array<i64: 8, 128>}, {pipeline_mode = #tpu.pipeline_mode<synchronous>, transform_indices = @transform_10, window_bounds = array<i64: 1, 128>}, {pipeline_mode = #tpu.pipeline_mode<synchronous>, transform_indices = @transform_11, window_bounds = array<i64: 1, 256>}, {pipeline_mode = #tpu.pipeline_mode<synchronous>, transform_indices = @transform_12, window_bounds = array<i64: 1, 128>}, {pipeline_mode = #tpu.pipeline_mode<synchronous>, transform_indices = @transform_13, window_bounds = array<i64: 1, 128>}, {pipeline_mode = #tpu.pipeline_mode<synchronous>, transform_indices = @transform_14, window_bounds = array<i64: 1, 128>}, {pipeline_mode = #tpu.pipeline_mode<synchronous>, transform_indices = @transform_15, window_bounds = array<i64: 1, 128>}, {transform_indices = @transform_16, window_bounds = array<i64: 2, 8, 128>}]} {
    %c0 = arith.constant 0 : index
    %c0_0 = arith.constant 0 : index
    %c0_1 = arith.constant 0 : index
    %0 = vector.load %arg1[%c0, %c0_0, %c0_1] : memref<2x8x128xf32, #tpu.memory_space<vmem>>, vector<2x8x128xf32>
    %1 = arith.truncf %0 : vector<2x8x128xf32> to vector<2x8x128xbf16>
    %2 = vector.shape_cast %1 : vector<2x8x128xbf16> to vector<16x128xbf16>
    %c0_2 = arith.constant 0 : index
    %c0_3 = arith.constant 0 : index
    %c0_4 = arith.constant 0 : index
    %3 = vector.load %arg2[%c0_2, %c0_3, %c0_4] : memref<2x1x128xf32, #tpu.memory_space<vmem>>, vector<2x1x128xf32>
    %4 = vector.shape_cast %3 : vector<2x1x128xf32> to vector<2x128xf32>
    %5 = arith.truncf %4 : vector<2x128xf32> to vector<2x128xbf16>
    %c0_5 = arith.constant 0 : index
    %c0_6 = arith.constant 0 : index
    %c0_7 = arith.constant 0 : index
    %6 = vector.load %arg3[%c0_5, %c0_6, %c0_7] : memref<2x1x8xf32, #tpu.memory_space<vmem>>, vector<2x1x8xf32>
    %c0_8 = arith.constant 0 : index
    %c0_9 = arith.constant 0 : index
    %7 = vector.load %arg10[%c0_8, %c0_9] : memref<8x128xbf16, #tpu.memory_space<vmem>>, vector<8x128xbf16>
    %c0_10 = arith.constant 0 : index
    %c0_11 = arith.constant 0 : index
    %8 = vector.load %arg4[%c0_10, %c0_11] : memref<128x128xbf16, #tpu.memory_space<vmem>>, vector<128x128xbf16>
    %cst = arith.constant dense<0.000000e+00> : vector<2x128xf32>
    %9 = tpu.matmul %5, %8, %cst {dimension_numbers = #tpu.dot_dimension_numbers<[1], [0], [0], [1], [0, 0, 1, 1], [], []>} : vector<2x128xbf16>, vector<128x128xbf16>, vector<2x128xf32> -> vector<2x128xf32>
    %c0_12 = arith.constant 0 : index
    %c0_13 = arith.constant 0 : index
    %10 = vector.load %arg11[%c0_12, %c0_13] : memref<1x128xf32, #tpu.memory_space<vmem>>, vector<1x128xf32>
    %11 = vector.broadcast %10 : vector<1x128xf32> to vector<2x128xf32>
    %12 = arith.addf %9, %11 : vector<2x128xf32>
    %cst_14 = arith.constant 0.353553385 : f32
    %13 = vector.broadcast %cst_14 : f32 to vector<2x128xf32>
    %14 = arith.mulf %12, %13 : vector<2x128xf32>
    %c0_15 = arith.constant 0 : index
    %c0_16 = arith.constant 0 : index
    %15 = vector.load %arg5[%c0_15, %c0_16] : memref<128x256xbf16, #tpu.memory_space<vmem>>, vector<128x256xbf16>
    %cst_17 = arith.constant dense<0.000000e+00> : vector<16x256xf32>
    %16 = tpu.matmul %2, %15, %cst_17 {dimension_numbers = #tpu.dot_dimension_numbers<[1], [0], [0], [1], [0, 0, 1, 1], [], []>} : vector<16x128xbf16>, vector<128x256xbf16>, vector<16x256xf32> -> vector<16x256xf32>
    %c0_18 = arith.constant 0 : index
    %c0_19 = arith.constant 0 : index
    %17 = vector.load %arg12[%c0_18, %c0_19] : memref<1x256xf32, #tpu.memory_space<vmem>>, vector<1x256xf32>
    %18 = vector.broadcast %17 : vector<1x256xf32> to vector<16x256xf32>
    %19 = arith.addf %16, %18 : vector<16x256xf32>
    %20 = arith.truncf %19 : vector<16x256xf32> to vector<16x256xbf16>
    %21 = vector.extract_strided_slice %20 {offsets = [0, 0], sizes = [16, 128], strides = [1, 1]} : vector<16x256xbf16> to vector<16x128xbf16>
    %22 = vector.shape_cast %21 : vector<16x128xbf16> to vector<2x8x128xbf16>
    %23 = vector.extract_strided_slice %20 {offsets = [0, 128], sizes = [16, 128], strides = [1, 1]} : vector<16x256xbf16> to vector<16x128xbf16>
    %24 = vector.shape_cast %23 : vector<16x128xbf16> to vector<2x8x128xbf16>
    %25 = arith.truncf %14 : vector<2x128xf32> to vector<2x128xbf16>
    %26 = vector.shape_cast %25 : vector<2x128xbf16> to vector<2x1x128xbf16>
    %27 = vector.shape_cast %7 : vector<8x128xbf16> to vector<1x8x128xbf16>
    %28 = vector.broadcast %26 : vector<2x1x128xbf16> to vector<2x8x128xbf16>
    %29 = vector.broadcast %27 : vector<1x8x128xbf16> to vector<2x8x128xbf16>
    %30 = arith.mulf %28, %29 : vector<2x8x128xbf16>
    "tpu.trace_start"() <{level = 10 : i32, message = "bhe,bse->bhs"}> : () -> ()
    %cst_20 = arith.constant dense<0.000000e+00> : vector<2x8x8xf32>
    %31 = tpu.matmul %30, %22, %cst_20 {dimension_numbers = #tpu.dot_dimension_numbers<[2], [2], [1], [1], [0, 0, 0, 1, 1, 1], [0], [0]>} : vector<2x8x128xbf16>, vector<2x8x128xbf16>, vector<2x8x8xf32> -> vector<2x8x8xf32>
    "tpu.trace_stop"() : () -> ()
    %32 = vector.broadcast %6 : vector<2x1x8xf32> to vector<2x8x8xf32>
    %33 = arith.addf %31, %32 : vector<2x8x8xf32>
    %cst_21 = arith.constant dense<0xFF800000> : vector<2x8xf32>
    %34 = vector.multi_reduction <maximumf>, %33, %cst_21 [2] : vector<2x8x8xf32> to vector<2x8xf32>
    %35 = vector.shape_cast %34 : vector<2x8xf32> to vector<2x8x1xf32>
    %36 = vector.broadcast %35 : vector<2x8x1xf32> to vector<2x8x8xf32>
    %37 = arith.subf %33, %36 : vector<2x8x8xf32>
    %38 = math.exp %37 : vector<2x8x8xf32>
    %cst_22 = arith.constant dense<0.000000e+00> : vector<2x8xf32>
    %39 = vector.multi_reduction <add>, %38, %cst_22 [2] : vector<2x8x8xf32> to vector<2x8xf32>
    %40 = vector.shape_cast %39 : vector<2x8xf32> to vector<2x8x1xf32>
    %41 = tpu.reciprocal %40 {approx = true} : vector<2x8x1xf32> -> vector<2x8x1xf32>
    %42 = vector.broadcast %41 : vector<2x8x1xf32> to vector<2x8x8xf32>
    %43 = arith.mulf %38, %42 : vector<2x8x8xf32>
    %44 = arith.truncf %43 : vector<2x8x8xf32> to vector<2x8x8xbf16>
    "tpu.trace_start"() <{level = 10 : i32, message = "bhs,bse->bhe"}> : () -> ()
    %cst_23 = arith.constant dense<0.000000e+00> : vector<2x8x128xf32>
    %45 = tpu.matmul %44, %24, %cst_23 {dimension_numbers = #tpu.dot_dimension_numbers<[2], [1], [1], [2], [0, 0, 0, 1, 1, 2], [0], [0]>} : vector<2x8x8xbf16>, vector<2x8x128xbf16>, vector<2x8x128xf32> -> vector<2x8x128xf32>
    "tpu.trace_stop"() : () -> ()
    %46 = vector.shape_cast %7 : vector<8x128xbf16> to vector<1x8x128xbf16>
    %47 = arith.extf %46 : vector<1x8x128xbf16> to vector<1x8x128xf32>
    %48 = vector.broadcast %47 : vector<1x8x128xf32> to vector<2x8x128xf32>
    %49 = arith.mulf %45, %48 : vector<2x8x128xf32>
    %cst_24 = arith.constant dense<0.000000e+00> : vector<2x128xf32>
    %50 = vector.multi_reduction <add>, %49, %cst_24 [1] : vector<2x8x128xf32> to vector<2x128xf32>
    %51 = arith.truncf %50 : vector<2x128xf32> to vector<2x128xbf16>
    %c0_25 = arith.constant 0 : index
    %c0_26 = arith.constant 0 : index
    %52 = vector.load %arg6[%c0_25, %c0_26] : memref<128x128xbf16, #tpu.memory_space<vmem>>, vector<128x128xbf16>
    %cst_27 = arith.constant dense<0.000000e+00> : vector<2x128xf32>
    %53 = tpu.matmul %51, %52, %cst_27 {dimension_numbers = #tpu.dot_dimension_numbers<[1], [0], [0], [1], [0, 0, 1, 1], [], []>} : vector<2x128xbf16>, vector<128x128xbf16>, vector<2x128xf32> -> vector<2x128xf32>
    %c0_28 = arith.constant 0 : index
    %c0_29 = arith.constant 0 : index
    %54 = vector.load %arg13[%c0_28, %c0_29] : memref<1x128xf32, #tpu.memory_space<vmem>>, vector<1x128xf32>
    %55 = vector.broadcast %54 : vector<1x128xf32> to vector<2x128xf32>
    %56 = arith.addf %53, %55 : vector<2x128xf32>
    %57 = arith.truncf %56 : vector<2x128xf32> to vector<2x128xbf16>
    %c0_30 = arith.constant 0 : index
    %c0_31 = arith.constant 0 : index
    %58 = vector.load %arg7[%c0_30, %c0_31] : memref<128x128xbf16, #tpu.memory_space<vmem>>, vector<128x128xbf16>
    %cst_32 = arith.constant dense<0.000000e+00> : vector<2x128xf32>
    %59 = tpu.matmul %57, %58, %cst_32 {dimension_numbers = #tpu.dot_dimension_numbers<[1], [0], [0], [1], [0, 0, 1, 1], [], []>} : vector<2x128xbf16>, vector<128x128xbf16>, vector<2x128xf32> -> vector<2x128xf32>
    %c0_33 = arith.constant 0 : index
    %c0_34 = arith.constant 0 : index
    %60 = vector.load %arg14[%c0_33, %c0_34] : memref<1x128xf32, #tpu.memory_space<vmem>>, vector<1x128xf32>
    %61 = vector.broadcast %60 : vector<1x128xf32> to vector<2x128xf32>
    %62 = arith.addf %59, %61 : vector<2x128xf32>
    %63 = arith.mulf %62, %62 : vector<2x128xf32>
    %64 = arith.mulf %62, %63 : vector<2x128xf32>
    %cst_35 = arith.constant 4.471500e-02 : f32
    %65 = vector.broadcast %cst_35 : f32 to vector<2x128xf32>
    %66 = arith.mulf %65, %64 : vector<2x128xf32>
    %67 = arith.addf %62, %66 : vector<2x128xf32>
    %cst_36 = arith.constant 0.797884583 : f32
    %68 = vector.broadcast %cst_36 : f32 to vector<2x128xf32>
    %69 = arith.mulf %68, %67 : vector<2x128xf32>
    %70 = math.tanh %69 : vector<2x128xf32>
    %cst_37 = arith.constant 1.000000e+00 : f32
    %71 = vector.broadcast %cst_37 : f32 to vector<2x128xf32>
    %72 = arith.addf %71, %70 : vector<2x128xf32>
    %cst_38 = arith.constant 5.000000e-01 : f32
    %73 = vector.broadcast %cst_38 : f32 to vector<2x128xf32>
    %74 = arith.mulf %73, %72 : vector<2x128xf32>
    %75 = arith.mulf %62, %74 : vector<2x128xf32>
    %76 = arith.truncf %75 : vector<2x128xf32> to vector<2x128xbf16>
    %c0_39 = arith.constant 0 : index
    %c0_40 = arith.constant 0 : index
    %77 = vector.load %arg9[%c0_39, %c0_40] : memref<128x128xbf16, #tpu.memory_space<vmem>>, vector<128x128xbf16>
    %cst_41 = arith.constant dense<0.000000e+00> : vector<2x128xf32>
    %78 = tpu.matmul %76, %77, %cst_41 {dimension_numbers = #tpu.dot_dimension_numbers<[1], [0], [0], [1], [0, 0, 1, 1], [], []>} : vector<2x128xbf16>, vector<128x128xbf16>, vector<2x128xf32> -> vector<2x128xf32>
    %c0_42 = arith.constant 0 : index
    %c0_43 = arith.constant 0 : index
    %79 = vector.load %arg16[%c0_42, %c0_43] : memref<1x128xf32, #tpu.memory_space<vmem>>, vector<1x128xf32>
    %80 = vector.broadcast %79 : vector<1x128xf32> to vector<2x128xf32>
    %81 = arith.addf %78, %80 : vector<2x128xf32>
    %82 = arith.truncf %81 : vector<2x128xf32> to vector<2x128xbf16>
    %83 = vector.shape_cast %82 : vector<2x128xbf16> to vector<2x1x128xbf16>
    %84 = vector.broadcast %83 : vector<2x1x128xbf16> to vector<2x8x128xbf16>
    %85 = arith.addf %1, %84 : vector<2x8x128xbf16>
    %86 = vector.shape_cast %85 : vector<2x8x128xbf16> to vector<16x128xbf16>
    %c0_44 = arith.constant 0 : index
    %c0_45 = arith.constant 0 : index
    %87 = vector.load %arg8[%c0_44, %c0_45] : memref<128x128xbf16, #tpu.memory_space<vmem>>, vector<128x128xbf16>
    %cst_46 = arith.constant dense<0.000000e+00> : vector<16x128xf32>
    %88 = tpu.matmul %86, %87, %cst_46 {dimension_numbers = #tpu.dot_dimension_numbers<[1], [0], [0], [1], [0, 0, 1, 1], [], []>} : vector<16x128xbf16>, vector<128x128xbf16>, vector<16x128xf32> -> vector<16x128xf32>
    %c0_47 = arith.constant 0 : index
    %c0_48 = arith.constant 0 : index
    %89 = vector.load %arg15[%c0_47, %c0_48] : memref<1x128xf32, #tpu.memory_space<vmem>>, vector<1x128xf32>
    %90 = vector.broadcast %89 : vector<1x128xf32> to vector<16x128xf32>
    %91 = arith.addf %88, %90 : vector<16x128xf32>
    %92 = arith.mulf %91, %91 : vector<16x128xf32>
    %93 = arith.mulf %91, %92 : vector<16x128xf32>
    %cst_49 = arith.constant 4.471500e-02 : f32
    %94 = vector.broadcast %cst_49 : f32 to vector<16x128xf32>
    %95 = arith.mulf %94, %93 : vector<16x128xf32>
    %96 = arith.addf %91, %95 : vector<16x128xf32>
    %cst_50 = arith.constant 0.797884583 : f32
    %97 = vector.broadcast %cst_50 : f32 to vector<16x128xf32>
    %98 = arith.mulf %97, %96 : vector<16x128xf32>
    %99 = math.tanh %98 : vector<16x128xf32>
    %cst_51 = arith.constant 1.000000e+00 : f32
    %100 = vector.broadcast %cst_51 : f32 to vector<16x128xf32>
    %101 = arith.addf %100, %99 : vector<16x128xf32>
    %cst_52 = arith.constant 5.000000e-01 : f32
    %102 = vector.broadcast %cst_52 : f32 to vector<16x128xf32>
    %103 = arith.mulf %102, %101 : vector<16x128xf32>
    %104 = arith.mulf %91, %103 : vector<16x128xf32>
    %105 = arith.truncf %104 : vector<16x128xf32> to vector<16x128xbf16>
    %c0_53 = arith.constant 0 : index
    %c0_54 = arith.constant 0 : index
    %106 = vector.load %arg9[%c0_53, %c0_54] : memref<128x128xbf16, #tpu.memory_space<vmem>>, vector<128x128xbf16>
    %cst_55 = arith.constant dense<0.000000e+00> : vector<16x128xf32>
    %107 = tpu.matmul %105, %106, %cst_55 {dimension_numbers = #tpu.dot_dimension_numbers<[1], [0], [0], [1], [0, 0, 1, 1], [], []>} : vector<16x128xbf16>, vector<128x128xbf16>, vector<16x128xf32> -> vector<16x128xf32>
    %c0_56 = arith.constant 0 : index
    %c0_57 = arith.constant 0 : index
    %108 = vector.load %arg16[%c0_56, %c0_57] : memref<1x128xf32, #tpu.memory_space<vmem>>, vector<1x128xf32>
    %109 = vector.broadcast %108 : vector<1x128xf32> to vector<16x128xf32>
    %110 = arith.addf %107, %109 : vector<16x128xf32>
    %111 = vector.shape_cast %110 : vector<16x128xf32> to vector<2x8x128xf32>
    %112 = arith.addf %111, %0 : vector<2x8x128xf32>
    %c0_58 = arith.constant 0 : index
    %c0_59 = arith.constant 0 : index
    %c0_60 = arith.constant 0 : index
    %113 = vector.load %arg17[%c0_58, %c0_59, %c0_60] : memref<2x8x128xf32, #tpu.memory_space<vmem>>, vector<2x8x128xf32>
    tpu.vector_store %arg17[%c0_58, %c0_59, %c0_60], %112 {strides = array<i32>} : memref<2x8x128xf32, #tpu.memory_space<vmem>>, vector<2x8x128xf32>,
    return
  }
  func.func @transform_0(%arg0: i32) -> (i32, i32, i32) {
    %c0_i32 = arith.constant 0 : i32
    %c0_i32_0 = arith.constant 0 : i32
    %c0_i32_1 = arith.constant 0 : i32
    return %arg0, %c0_i32, %c0_i32_0 : i32, i32, i32
  }
  func.func @transform_1(%arg0: i32) -> (i32, i32, i32) {
    %c0_i32 = arith.constant 0 : i32
    %c0_i32_0 = arith.constant 0 : i32
    %c0_i32_1 = arith.constant 0 : i32
    return %arg0, %c0_i32, %c0_i32_0 : i32, i32, i32
  }
  func.func @transform_2(%arg0: i32) -> (i32, i32, i32) {
    %c0_i32 = arith.constant 0 : i32
    %c0_i32_0 = arith.constant 0 : i32
    %c0_i32_1 = arith.constant 0 : i32
    return %arg0, %c0_i32, %c0_i32_0 : i32, i32, i32
  }
  func.func @transform_3(%arg0: i32) -> (i32, i32) {
    %c0_i32 = arith.constant 0 : i32
    %c0_i32_0 = arith.constant 0 : i32
    %c0_i32_1 = arith.constant 0 : i32
    return %c0_i32, %c0_i32_0 : i32, i32
  }
  func.func @transform_4(%arg0: i32) -> (i32, i32) {
    %c0_i32 = arith.constant 0 : i32
    %c0_i32_0 = arith.constant 0 : i32
    %c0_i32_1 = arith.constant 0 : i32
    return %c0_i32, %c0_i32_0 : i32, i32
  }
  func.func @transform_5(%arg0: i32) -> (i32, i32) {
    %c0_i32 = arith.constant 0 : i32
    %c0_i32_0 = arith.constant 0 : i32
    %c0_i32_1 = arith.constant 0 : i32
    return %c0_i32, %c0_i32_0 : i32, i32
  }
  func.func @transform_6(%arg0: i32) -> (i32, i32) {
    %c0_i32 = arith.constant 0 : i32
    %c0_i32_0 = arith.constant 0 : i32
    %c0_i32_1 = arith.constant 0 : i32
    return %c0_i32, %c0_i32_0 : i32, i32
  }
  func.func @transform_7(%arg0: i32) -> (i32, i32) {
    %c0_i32 = arith.constant 0 : i32
    %c0_i32_0 = arith.constant 0 : i32
    %c0_i32_1 = arith.constant 0 : i32
    return %c0_i32, %c0_i32_0 : i32, i32
  }
  func.func @transform_8(%arg0: i32) -> (i32, i32) {
    %c0_i32 = arith.constant 0 : i32
    %c0_i32_0 = arith.constant 0 : i32
    %c0_i32_1 = arith.constant 0 : i32
    return %c0_i32, %c0_i32_0 : i32, i32
  }
  func.func @transform_9(%arg0: i32) -> (i32, i32) {
    %c0_i32 = arith.constant 0 : i32
    %c0_i32_0 = arith.constant 0 : i32
    %c0_i32_1 = arith.constant 0 : i32
    return %c0_i32, %c0_i32_0 : i32, i32
  }
  func.func @transform_10(%arg0: i32) -> (i32, i32) {
    %c0_i32 = arith.constant 0 : i32
    %c0_i32_0 = arith.constant 0 : i32
    %c0_i32_1 = arith.constant 0 : i32
    return %c0_i32, %c0_i32_0 : i32, i32
  }
  func.func @transform_11(%arg0: i32) -> (i32, i32) {
    %c0_i32 = arith.constant 0 : i32
    %c0_i32_0 = arith.constant 0 : i32
    %c0_i32_1 = arith.constant 0 : i32
    return %c0_i32, %c0_i32_0 : i32, i32
  }
  func.func @transform_12(%arg0: i32) -> (i32, i32) {
    %c0_i32 = arith.constant 0 : i32
    %c0_i32_0 = arith.constant 0 : i32
    %c0_i32_1 = arith.constant 0 : i32
    return %c0_i32, %c0_i32_0 : i32, i32
  }
  func.func @transform_13(%arg0: i32) -> (i32, i32) {
    %c0_i32 = arith.constant 0 : i32
    %c0_i32_0 = arith.constant 0 : i32
    %c0_i32_1 = arith.constant 0 : i32
    return %c0_i32, %c0_i32_0 : i32, i32
  }
  func.func @transform_14(%arg0: i32) -> (i32, i32) {
    %c0_i32 = arith.constant 0 : i32
    %c0_i32_0 = arith.constant 0 : i32
    %c0_i32_1 = arith.constant 0 : i32
    return %c0_i32, %c0_i32_0 : i32, i32
  }
  func.func @transform_15(%arg0: i32) -> (i32, i32) {
    %c0_i32 = arith.constant 0 : i32
    %c0_i32_0 = arith.constant 0 : i32
    %c0_i32_1 = arith.constant 0 : i32
    return %c0_i32, %c0_i32_0 : i32, i32
  }
  func.func @transform_16(%arg0: i32) -> (i32, i32, i32) {
    %c0_i32 = arith.constant 0 : i32
    %c0_i32_0 = arith.constant 0 : i32
    %c0_i32_1 = arith.constant 0 : i32
    return %arg0, %c0_i32, %c0_i32_0 : i32, i32, i32
  }
}

module attributes {stable_mosaic.version = 11 : i64} {
  func.func @block_kernel(%arg0: i32, %arg1: memref<2x8x128xf32, #tpu.memory_space<vmem>>, %arg2: memref<2x1x128xf32, #tpu.memory_space<vmem>>, %arg3: memref<2x1x8xf32, #tpu.memory_space<vmem>>, %arg4: memref<128x128xbf16, #tpu.memory_space<vmem>>, %arg5: memref<128x256xbf16, #tpu.memory_space<vmem>>, %arg6: memref<128x128xbf16, #tpu.memory_space<vmem>>, %arg7: memref<128x128xbf16, #tpu.memory_space<vmem>>, %arg8: memref<128x128xbf16, #tpu.memory_space<vmem>>, %arg9: memref<128x128xbf16, #tpu.memory_space<vmem>>, %arg10: memref<8x128xbf16, #tpu.memory_space<vmem>>, %arg11: memref<1x128xf32, #tpu.memory_space<vmem>>, %arg12: memref<1x256xf32, #tpu.memory_space<vmem>>, %arg13: memref<1x128xf32, #tpu.memory_space<vmem>>, %arg14: memref<1x128xf32, #tpu.memory_space<vmem>>, %arg15: memref<1x128xf32, #tpu.memory_space<vmem>>, %arg16: memref<1x128xf32, #tpu.memory_space<vmem>>, %arg17: memref<2x8x128xf32, #tpu.memory_space<vmem>>) attributes {dimension_semantics = [#tpu.dimension_semantics<parallel>], iteration_bounds = array<i64: 1>, scalar_prefetch = 0 : i64, scratch_operands = 0 : i64, tpu.core_type = #tpu.core_type<tc>, window_params = [{transform_indices = @transform_0, window_bounds = array<i64: 2, 8, 128>}, {transform_indices = @transform_1, window_bounds = array<i64: 2, 1, 128>}, {transform_indices = @transform_2, window_bounds = array<i64: 2, 1, 8>}, {pipeline_mode = #tpu.pipeline_mode<synchronous>, transform_indices = @transform_3, window_bounds = array<i64: 128, 128>}, {pipeline_mode = #tpu.pipeline_mode<synchronous>, transform_indices = @transform_4, window_bounds = array<i64: 128, 256>}, {pipeline_mode = #tpu.pipeline_mode<synchronous>, transform_indices = @transform_5, window_bounds = array<i64: 128, 128>}, {pipeline_mode = #tpu.pipeline_mode<synchronous>, transform_indices = @transform_6, window_bounds = array<i64: 128, 128>}, {pipeline_mode = #tpu.pipeline_mode<synchronous>, transform_indices = @transform_7, window_bounds = array<i64: 128, 128>}, {pipeline_mode = #tpu.pipeline_mode<synchronous>, transform_indices = @transform_8, window_bounds = array<i64: 128, 128>}, {pipeline_mode = #tpu.pipeline_mode<synchronous>, transform_indices = @transform_9, window_bounds = array<i64: 8, 128>}, {pipeline_mode = #tpu.pipeline_mode<synchronous>, transform_indices = @transform_10, window_bounds = array<i64: 1, 128>}, {pipeline_mode = #tpu.pipeline_mode<synchronous>, transform_indices = @transform_11, window_bounds = array<i64: 1, 256>}, {pipeline_mode = #tpu.pipeline_mode<synchronous>, transform_indices = @transform_12, window_bounds = array<i64: 1, 128>}, {pipeline_mode = #tpu.pipeline_mode<synchronous>, transform_indices = @transform_13, window_bounds = array<i64: 1, 128>}, {pipeline_mode = #tpu.pipeline_mode<synchronous>, transform_indices = @transform_14, window_bounds = array<i64: 1, 128>}, {pipeline_mode = #tpu.pipeline_mode<synchronous>, transform_indices = @transform_15, window_bounds = array<i64: 1, 128>}, {transform_indices = @transform_16, window_bounds = array<i64: 2, 8, 128>}]} {
    %c0 = arith.constant 0 : index
    %c0_0 = arith.constant 0 : index
    %c0_1 = arith.constant 0 : index
    %0 = vector.load %arg1[%c0, %c0_0, %c0_1] : memref<2x8x128xf32, #tpu.memory_space<vmem>>, vector<2x8x128xf32>
    %1 = arith.truncf %0 : vector<2x8x128xf32> to vector<2x8x128xbf16>
    %2 = vector.shape_cast %1 : vector<2x8x128xbf16> to vector<16x128xbf16>
    %c0_2 = arith.constant 0 : index
    %c0_3 = arith.constant 0 : index
    %c0_4 = arith.constant 0 : index
    %3 = vector.load %arg2[%c0_2, %c0_3, %c0_4] : memref<2x1x128xf32, #tpu.memory_space<vmem>>, vector<2x1x128xf32>
    %4 = vector.shape_cast %3 : vector<2x1x128xf32> to vector<2x128xf32>
    %5 = arith.truncf %4 : vector<2x128xf32> to vector<2x128xbf16>
    %c0_5 = arith.constant 0 : index
    %c0_6 = arith.constant 0 : index
    %c0_7 = arith.constant 0 : index
    %6 = vector.load %arg3[%c0_5, %c0_6, %c0_7] : memref<2x1x8xf32, #tpu.memory_space<vmem>>, vector<2x1x8xf32>
    %c0_8 = arith.constant 0 : index
    %c0_9 = arith.constant 0 : index
    %7 = vector.load %arg10[%c0_8, %c0_9] : memref<8x128xbf16, #tpu.memory_space<vmem>>, vector<8x128xbf16>
    %c0_10 = arith.constant 0 : index
    %c0_11 = arith.constant 0 : index
    %8 = vector.load %arg4[%c0_10, %c0_11] : memref<128x128xbf16, #tpu.memory_space<vmem>>, vector<128x128xbf16>
    %cst = arith.constant dense<0.000000e+00> : vector<2x128xf32>
    %9 = tpu.matmul %5, %8, %cst {dimension_numbers = #tpu.dot_dimension_numbers<[1], [0], [0], [1], [0, 0, 1, 1], [], []>} : vector<2x128xbf16>, vector<128x128xbf16>, vector<2x128xf32> -> vector<2x128xf32>
    %c0_12 = arith.constant 0 : index
    %c0_13 = arith.constant 0 : index
    %10 = vector.load %arg11[%c0_12, %c0_13] : memref<1x128xf32, #tpu.memory_space<vmem>>, vector<1x128xf32>
    %11 = vector.broadcast %10 : vector<1x128xf32> to vector<2x128xf32>
    %12 = arith.addf %9, %11 : vector<2x128xf32>
    %cst_14 = arith.constant 0.353553385 : f32
    %13 = vector.broadcast %cst_14 : f32 to vector<2x128xf32>
    %14 = arith.mulf %12, %13 : vector<2x128xf32>
    %c0_15 = arith.constant 0 : index
    %c0_16 = arith.constant 0 : index
    %15 = vector.load %arg5[%c0_15, %c0_16] : memref<128x256xbf16, #tpu.memory_space<vmem>>, vector<128x256xbf16>
    %cst_17 = arith.constant dense<0.000000e+00> : vector<16x256xf32>
    %16 = tpu.matmul %2, %15, %cst_17 {dimension_numbers = #tpu.dot_dimension_numbers<[1], [0], [0], [1], [0, 0, 1, 1], [], []>} : vector<16x128xbf16>, vector<128x256xbf16>, vector<16x256xf32> -> vector<16x256xf32>
    %c0_18 = arith.constant 0 : index
    %c0_19 = arith.constant 0 : index
    %17 = vector.load %arg12[%c0_18, %c0_19] : memref<1x256xf32, #tpu.memory_space<vmem>>, vector<1x256xf32>
    %18 = vector.broadcast %17 : vector<1x256xf32> to vector<16x256xf32>
    %19 = arith.addf %16, %18 : vector<16x256xf32>
    %20 = arith.truncf %19 : vector<16x256xf32> to vector<16x256xbf16>
    %21 = vector.extract_strided_slice %20 {offsets = [0, 0], sizes = [16, 128], strides = [1, 1]} : vector<16x256xbf16> to vector<16x128xbf16>
    %22 = vector.shape_cast %21 : vector<16x128xbf16> to vector<2x8x128xbf16>
    %23 = vector.extract_strided_slice %20 {offsets = [0, 128], sizes = [16, 128], strides = [1, 1]} : vector<16x256xbf16> to vector<16x128xbf16>
    %24 = vector.shape_cast %23 : vector<16x128xbf16> to vector<2x8x128xbf16>
    %25 = arith.truncf %14 : vector<2x128xf32> to vector<2x128xbf16>
    %26 = vector.shape_cast %25 : vector<2x128xbf16> to vector<2x1x128xbf16>
    %27 = vector.shape_cast %7 : vector<8x128xbf16> to vector<1x8x128xbf16>
    %28 = vector.broadcast %26 : vector<2x1x128xbf16> to vector<2x8x128xbf16>
    %29 = vector.broadcast %27 : vector<1x8x128xbf16> to vector<2x8x128xbf16>
    %30 = arith.mulf %28, %29 : vector<2x8x128xbf16>
    "tpu.trace_start"() <{level = 10 : i32, message = "bhe,bse->bhs"}> : () -> ()
    %cst_20 = arith.constant dense<0.000000e+00> : vector<2x8x8xf32>
    %31 = tpu.matmul %30, %22, %cst_20 {dimension_numbers = #tpu.dot_dimension_numbers<[2], [2], [1], [1], [0, 0, 0, 1, 1, 1], [0], [0]>} : vector<2x8x128xbf16>, vector<2x8x128xbf16>, vector<2x8x8xf32> -> vector<2x8x8xf32>
    "tpu.trace_stop"() : () -> ()
    %32 = vector.broadcast %6 : vector<2x1x8xf32> to vector<2x8x8xf32>
    %33 = arith.addf %31, %32 : vector<2x8x8xf32>
    %cst_21 = arith.constant dense<0xFF800000> : vector<2x8xf32>
    %34 = vector.multi_reduction <maximumf>, %33, %cst_21 [2] : vector<2x8x8xf32> to vector<2x8xf32>
    %35 = vector.shape_cast %34 : vector<2x8xf32> to vector<2x8x1xf32>
    %36 = vector.broadcast %35 : vector<2x8x1xf32> to vector<2x8x8xf32>
    %37 = arith.subf %33, %36 : vector<2x8x8xf32>
    %38 = math.exp %37 : vector<2x8x8xf32>
    %cst_22 = arith.constant dense<0.000000e+00> : vector<2x8xf32>
    %39 = vector.multi_reduction <add>, %38, %cst_22 [2] : vector<2x8x8xf32> to vector<2x8xf32>
    %40 = vector.shape_cast %39 : vector<2x8xf32> to vector<2x8x1xf32>
    %41 = tpu.reciprocal %40 {approx = true} : vector<2x8x1xf32> -> vector<2x8x1xf32>
    %42 = vector.broadcast %41 : vector<2x8x1xf32> to vector<2x8x8xf32>
    %43 = arith.mulf %38, %42 : vector<2x8x8xf32>
    %44 = arith.truncf %43 : vector<2x8x8xf32> to vector<2x8x8xbf16>
    "tpu.trace_start"() <{level = 10 : i32, message = "bhs,bse->bhe"}> : () -> ()
    %cst_23 = arith.constant dense<0.000000e+00> : vector<2x8x128xf32>
    %45 = tpu.matmul %44, %24, %cst_23 {dimension_numbers = #tpu.dot_dimension_numbers<[2], [1], [1], [2], [0, 0, 0, 1, 1, 2], [0], [0]>} : vector<2x8x8xbf16>, vector<2x8x128xbf16>, vector<2x8x128xf32> -> vector<2x8x128xf32>
    "tpu.trace_stop"() : () -> ()
    %46 = vector.shape_cast %7 : vector<8x128xbf16> to vector<1x8x128xbf16>
    %47 = arith.extf %46 : vector<1x8x128xbf16> to vector<1x8x128xf32>
    %48 = vector.broadcast %47 : vector<1x8x128xf32> to vector<2x8x128xf32>
    %49 = arith.mulf %45, %48 : vector<2x8x128xf32>
    %cst_24 = arith.constant dense<0.000000e+00> : vector<2x128xf32>
    %50 = vector.multi_reduction <add>, %49, %cst_24 [1] : vector<2x8x128xf32> to vector<2x128xf32>
    %51 = arith.truncf %50 : vector<2x128xf32> to vector<2x128xbf16>
    %c0_25 = arith.constant 0 : index
    %c0_26 = arith.constant 0 : index
    %52 = vector.load %arg6[%c0_25, %c0_26] : memref<128x128xbf16, #tpu.memory_space<vmem>>, vector<128x128xbf16>
    %cst_27 = arith.constant dense<0.000000e+00> : vector<2x128xf32>
    %53 = tpu.matmul %51, %52, %cst_27 {dimension_numbers = #tpu.dot_dimension_numbers<[1], [0], [0], [1], [0, 0, 1, 1], [], []>} : vector<2x128xbf16>, vector<128x128xbf16>, vector<2x128xf32> -> vector<2x128xf32>
    %c0_28 = arith.constant 0 : index
    %c0_29 = arith.constant 0 : index
    %54 = vector.load %arg13[%c0_28, %c0_29] : memref<1x128xf32, #tpu.memory_space<vmem>>, vector<1x128xf32>
    %55 = vector.broadcast %54 : vector<1x128xf32> to vector<2x128xf32>
    %56 = arith.addf %53, %55 : vector<2x128xf32>
    %57 = arith.truncf %56 : vector<2x128xf32> to vector<2x128xbf16>
    %c0_30 = arith.constant 0 : index
    %c0_31 = arith.constant 0 : index
    %58 = vector.load %arg7[%c0_30, %c0_31] : memref<128x128xbf16, #tpu.memory_space<vmem>>, vector<128x128xbf16>
    %cst_32 = arith.constant dense<0.000000e+00> : vector<2x128xf32>
    %59 = tpu.matmul %57, %58, %cst_32 {dimension_numbers = #tpu.dot_dimension_numbers<[1], [0], [0], [1], [0, 0, 1, 1], [], []>} : vector<2x128xbf16>, vector<128x128xbf16>, vector<2x128xf32> -> vector<2x128xf32>
    %c0_33 = arith.constant 0 : index
    %c0_34 = arith.constant 0 : index
    %60 = vector.load %arg14[%c0_33, %c0_34] : memref<1x128xf32, #tpu.memory_space<vmem>>, vector<1x128xf32>
    %61 = vector.broadcast %60 : vector<1x128xf32> to vector<2x128xf32>
    %62 = arith.addf %59, %61 : vector<2x128xf32>
    %63 = arith.mulf %62, %62 : vector<2x128xf32>
    %64 = arith.mulf %62, %63 : vector<2x128xf32>
    %cst_35 = arith.constant 4.471500e-02 : f32
    %65 = vector.broadcast %cst_35 : f32 to vector<2x128xf32>
    %66 = arith.mulf %65, %64 : vector<2x128xf32>
    %67 = arith.addf %62, %66 : vector<2x128xf32>
    %cst_36 = arith.constant 0.797884583 : f32
    %68 = vector.broadcast %cst_36 : f32 to vector<2x128xf32>
    %69 = arith.mulf %68, %67 : vector<2x128xf32>
    %70 = math.tanh %69 : vector<2x128xf32>
    %cst_37 = arith.constant 1.000000e+00 : f32
    %71 = vector.broadcast %cst_37 : f32 to vector<2x128xf32>
    %72 = arith.addf %71, %70 : vector<2x128xf32>
    %cst_38 = arith.constant 5.000000e-01 : f32
    %73 = vector.broadcast %cst_38 : f32 to vector<2x128xf32>
    %74 = arith.mulf %73, %72 : vector<2x128xf32>
    %75 = arith.mulf %62, %74 : vector<2x128xf32>
    %76 = arith.truncf %75 : vector<2x128xf32> to vector<2x128xbf16>
    %c0_39 = arith.constant 0 : index
    %c0_40 = arith.constant 0 : index
    %77 = vector.load %arg9[%c0_39, %c0_40] : memref<128x128xbf16, #tpu.memory_space<vmem>>, vector<128x128xbf16>
    %cst_41 = arith.constant dense<0.000000e+00> : vector<2x128xf32>
    %78 = tpu.matmul %76, %77, %cst_41 {dimension_numbers = #tpu.dot_dimension_numbers<[1], [0], [0], [1], [0, 0, 1, 1], [], []>} : vector<2x128xbf16>, vector<128x128xbf16>, vector<2x128xf32> -> vector<2x128xf32>
    %c0_42 = arith.constant 0 : index
    %c0_43 = arith.constant 0 : index
    %79 = vector.load %arg16[%c0_42, %c0_43] : memref<1x128xf32, #tpu.memory_space<vmem>>, vector<1x128xf32>
    %80 = vector.broadcast %79 : vector<1x128xf32> to vector<2x128xf32>
    %81 = arith.addf %78, %80 : vector<2x128xf32>
    %82 = arith.truncf %81 : vector<2x128xf32> to vector<2x128xbf16>
    %83 = vector.shape_cast %82 : vector<2x128xbf16> to vector<2x1x128xbf16>
    %84 = vector.broadcast %83 : vector<2x1x128xbf16> to vector<2x8x128xbf16>
    %85 = arith.addf %1, %84 : vector<2x8x128xbf16>
    %86 = vector.shape_cast %85 : vector<2x8x128xbf16> to vector<16x128xbf16>
    %c0_44 = arith.constant 0 : index
    %c0_45 = arith.constant 0 : index
    %87 = vector.load %arg8[%c0_44, %c0_45] : memref<128x128xbf16, #tpu.memory_space<vmem>>, vector<128x128xbf16>
    %cst_46 = arith.constant dense<0.000000e+00> : vector<16x128xf32>
    %88 = tpu.matmul %86, %87, %cst_46 {dimension_numbers = #tpu.dot_dimension_numbers<[1], [0], [0], [1], [0, 0, 1, 1], [], []>} : vector<16x128xbf16>, vector<128x128xbf16>, vector<16x128xf32> -> vector<16x128xf32>
    %c0_47 = arith.constant 0 : index
    %c0_48 = arith.constant 0 : index
    %89 = vector.load %arg15[%c0_47, %c0_48] : memref<1x128xf32, #tpu.memory_space<vmem>>, vector<1x128xf32>
    %90 = vector.broadcast %89 : vector<1x128xf32> to vector<16x128xf32>
    %91 = arith.addf %88, %90 : vector<16x128xf32>
    %92 = arith.mulf %91, %91 : vector<16x128xf32>
    %93 = arith.mulf %91, %92 : vector<16x128xf32>
    %cst_49 = arith.constant 4.471500e-02 : f32
    %94 = vector.broadcast %cst_49 : f32 to vector<16x128xf32>
    %95 = arith.mulf %94, %93 : vector<16x128xf32>
    %96 = arith.addf %91, %95 : vector<16x128xf32>
    %cst_50 = arith.constant 0.797884583 : f32
    %97 = vector.broadcast %cst_50 : f32 to vector<16x128xf32>
    %98 = arith.mulf %97, %96 : vector<16x128xf32>
    %99 = math.tanh %98 : vector<16x128xf32>
    %cst_51 = arith.constant 1.000000e+00 : f32
    %100 = vector.broadcast %cst_51 : f32 to vector<16x128xf32>
    %101 = arith.addf %100, %99 : vector<16x128xf32>
    %cst_52 = arith.constant 5.000000e-01 : f32
    %102 = vector.broadcast %cst_52 : f32 to vector<16x128xf32>
    %103 = arith.mulf %102, %101 : vector<16x128xf32>
    %104 = arith.mulf %91, %103 : vector<16x128xf32>
    %105 = arith.truncf %104 : vector<16x128xf32> to vector<16x128xbf16>
    %c0_53 = arith.constant 0 : index
    %c0_54 = arith.constant 0 : index
    %106 = vector.load %arg9[%c0_53, %c0_54] : memref<128x128xbf16, #tpu.memory_space<vmem>>, vector<128x128xbf16>
    %cst_55 = arith.constant dense<0.000000e+00> : vector<16x128xf32>
    %107 = tpu.matmul %105, %106, %cst_55 {dimension_numbers = #tpu.dot_dimension_numbers<[1], [0], [0], [1], [0, 0, 1, 1], [], []>} : vector<16x128xbf16>, vector<128x128xbf16>, vector<16x128xf32> -> vector<16x128xf32>
    %c0_56 = arith.constant 0 : index
    %c0_57 = arith.constant 0 : index
    %108 = vector.load %arg16[%c0_56, %c0_57] : memref<1x128xf32, #tpu.memory_space<vmem>>, vector<1x128xf32>
    %109 = vector.broadcast %108 : vector<1x128xf32> to vector<16x128xf32>
    %110 = arith.addf %107, %109 : vector<16x128xf32>
    %111 = vector.shape_cast %110 : vector<16x128xf32> to vector<2x8x128xf32>
    %112 = arith.addf %111, %0 : vector<2x8x128xf32>
    %c0_58 = arith.constant 0 : index
    %c0_59 = arith.constant 0 : index
    %c0_60 = arith.constant 0 : index
    %113 = vector.load %arg17[%c0_58, %c0_59, %c0_60] : memref<2x8x128xf32, #tpu.memory_space<vmem>>, vector<2x8x128xf32>
    tpu.vector_store %arg17[%c0_58, %c0_59, %c0_60], %112 {strides = array<i32>} : memref<2x8x128xf32, #tpu.memory_space<vmem>>, vector<2x8x128xf32>,
    return
  }
  func.func @transform_0(%arg0: i32) -> (i32, i32, i32) {
    %c0_i32 = arith.constant 0 : i32
    %c0_i32_0 = arith.constant 0 : i32
    %c0_i32_1 = arith.constant 0 : i32
    return %arg0, %c0_i32, %c0_i32_0 : i32, i32, i32
  }
  func.func @transform_1(%arg0: i32) -> (i32, i32, i32) {
    %c0_i32 = arith.constant 0 : i32
    %c0_i32_0 = arith.constant 0 : i32
    %c0_i32_1 = arith.constant 0 : i32
    return %arg0, %c0_i32, %c0_i32_0 : i32, i32, i32
  }
  func.func @transform_2(%arg0: i32) -> (i32, i32, i32) {
    %c0_i32 = arith.constant 0 : i32
    %c0_i32_0 = arith.constant 0 : i32
    %c0_i32_1 = arith.constant 0 : i32
    return %arg0, %c0_i32, %c0_i32_0 : i32, i32, i32
  }
  func.func @transform_3(%arg0: i32) -> (i32, i32) {
    %c0_i32 = arith.constant 0 : i32
    %c0_i32_0 = arith.constant 0 : i32
    %c0_i32_1 = arith.constant 0 : i32
    return %c0_i32, %c0_i32_0 : i32, i32
  }
  func.func @transform_4(%arg0: i32) -> (i32, i32) {
    %c0_i32 = arith.constant 0 : i32
    %c0_i32_0 = arith.constant 0 : i32
    %c0_i32_1 = arith.constant 0 : i32
    return %c0_i32, %c0_i32_0 : i32, i32
  }
  func.func @transform_5(%arg0: i32) -> (i32, i32) {
    %c0_i32 = arith.constant 0 : i32
    %c0_i32_0 = arith.constant 0 : i32
    %c0_i32_1 = arith.constant 0 : i32
    return %c0_i32, %c0_i32_0 : i32, i32
  }
  func.func @transform_6(%arg0: i32) -> (i32, i32) {
    %c0_i32 = arith.constant 0 : i32
    %c0_i32_0 = arith.constant 0 : i32
    %c0_i32_1 = arith.constant 0 : i32
    return %c0_i32, %c0_i32_0 : i32, i32
  }
  func.func @transform_7(%arg0: i32) -> (i32, i32) {
    %c0_i32 = arith.constant 0 : i32
    %c0_i32_0 = arith.constant 0 : i32
    %c0_i32_1 = arith.constant 0 : i32
    return %c0_i32, %c0_i32_0 : i32, i32
  }
  func.func @transform_8(%arg0: i32) -> (i32, i32) {
    %c0_i32 = arith.constant 0 : i32
    %c0_i32_0 = arith.constant 0 : i32
    %c0_i32_1 = arith.constant 0 : i32
    return %c0_i32, %c0_i32_0 : i32, i32
  }
  func.func @transform_9(%arg0: i32) -> (i32, i32) {
    %c0_i32 = arith.constant 0 : i32
    %c0_i32_0 = arith.constant 0 : i32
    %c0_i32_1 = arith.constant 0 : i32
    return %c0_i32, %c0_i32_0 : i32, i32
  }
  func.func @transform_10(%arg0: i32) -> (i32, i32) {
    %c0_i32 = arith.constant 0 : i32
    %c0_i32_0 = arith.constant 0 : i32
    %c0_i32_1 = arith.constant 0 : i32
    return %c0_i32, %c0_i32_0 : i32, i32
  }
  func.func @transform_11(%arg0: i32) -> (i32, i32) {
    %c0_i32 = arith.constant 0 : i32
    %c0_i32_0 = arith.constant 0 : i32
    %c0_i32_1 = arith.constant 0 : i32
    return %c0_i32, %c0_i32_0 : i32, i32
  }
  func.func @transform_12(%arg0: i32) -> (i32, i32) {
    %c0_i32 = arith.constant 0 : i32
    %c0_i32_0 = arith.constant 0 : i32
    %c0_i32_1 = arith.constant 0 : i32
    return %c0_i32, %c0_i32_0 : i32, i32
  }
  func.func @transform_13(%arg0: i32) -> (i32, i32) {
    %c0_i32 = arith.constant 0 : i32
    %c0_i32_0 = arith.constant 0 : i32
    %c0_i32_1 = arith.constant 0 : i32
    return %c0_i32, %c0_i32_0 : i32, i32
  }
  func.func @transform_14(%arg0: i32) -> (i32, i32) {
    %c0_i32 = arith.constant 0 : i32
    %c0_i32_0 = arith.constant 0 : i32
    %c0_i32_1 = arith.constant 0 : i32
    return %c0_i32, %c0_i32_0 : i32, i32
  }
  func.func @transform_15(%arg0: i32) -> (i32, i32) {
    %c0_i32 = arith.constant 0 : i32
    %c0_i32_0 = arith.constant 0 : i32
    %c0_i32_1 = arith.constant 0 : i32
    return %c0_i32, %c0_i32_0 : i32, i32
  }
  func.func @transform_16(%arg0: i32) -> (i32, i32, i32) {
    %c0_i32 = arith.constant 0 : i32
    %c0_i32_0 = arith.constant 0 : i32
    %c0_i32_1 = arith.constant 0 : i32
    return %arg0, %c0_i32, %c0_i32_0 : i32, i32, i32
  }
}

</mosaic_0001>

<bundles_post_ra>
// kernel: tpu_custom_call.1
= control target key start
LH: loop header
LB: loop body
LE: loop exit
PB: predicated region body
PF: predicated region fallthrough
CT: control target
= control target key end

     0   :  { %s2330_s0 = inlined_call_operand.hbm [shape: f32[2,8,128], index: 0, kind: input, shape index: {}]   ;;  %s2331_s1 = inlined_call_operand.vmem [shape: f32[2,1,128], index: 1, kind: input, shape index: {}]   ;;  %s2332_s2 = inlined_call_operand.hbm [shape: f32[2,1,8], index: 2, kind: input, shape index: {}]   ;;  %s2333_s3 = inlined_call_operand.hbm [shape: bf16[128,128], index: 3, kind: input, shape index: {}]   ;;  %s2334_s4 = inlined_call_operand.hbm [shape: bf16[128,256], index: 4, kind: input, shape index: {}]   ;;  %s2335_s5 = inlined_call_operand.hbm [shape: bf16[128,128], index: 5, kind: input, shape index: {}]   ;;  %s2336_s6 = inlined_call_operand.hbm [shape: bf16[128,128], index: 6, kind: input, shape index: {}]   ;;  %s2337_s7 = inlined_call_operand.hbm [shape: bf16[128,128], index: 7, kind: input, shape index: {}]   ;;  %s2338_s8 = inlined_call_operand.hbm [shape: bf16[128,128], index: 8, kind: input, shape index: {}]   ;;  %s2339_s9 = inlined_call_operand.vmem [shape: bf16[8,128], index: 9, kind: input, shape index: {}]   ;;  %s2340_s10 = inlined_call_operand.vmem [shape: f32[1,128], index: 10, kind: input, shape index: {}]   ;;  %s2341_s11 = inlined_call_operand.vmem [shape: f32[1,256], index: 11, kind: input, shape index: {}]   ;;  %s2342_s12 = inlined_call_operand.vmem [shape: f32[1,128], index: 12, kind: input, shape index: {}]   ;;  %s2343_s13 = inlined_call_operand.vmem [shape: f32[1,128], index: 13, kind: input, shape index: {}]   ;;  %s2344_s14 = inlined_call_operand.vmem [shape: f32[1,128], index: 14, kind: input, shape index: {}]   ;;  %s2345_s15 = inlined_call_operand.vmem [shape: f32[1,128], index: 15, kind: input, shape index: {}]   ;;  %s2346_s16 = inlined_call_operand.hbm [shape: f32[2,8,128], index: 16, kind: output, shape index: {}]  }
   0x1   :  { %2350 = sst [smem:[#allocation23_spill]] %s2330_s0 }
   0x2   :  { %21 = vsyncpa [#allocation3], 0 }
   0x3   :  { %22 = vsyncpa [#allocation6], 0 }
   0x4   :  { %23 = vsyncpa [#allocation9], 0 }
   0x5   :  { %24 = vsyncpa [#allocation12], 0 }
   0x6   :  { %25 = vsyncpa [#allocation15], 0 }
   0x7   :  { %26 = vsyncpa [#allocation4], 0  ;;  %s1927_s21 = smov [#allocation5]   ;;  %s1717_s25 = scalar_lea.hbm %s2332_s2, 32 }
   0x8   :  { %s46_s22 = sshll.u32 %s1927_s21, 4  ;;  %p1718_p0 = scmp.ne.s32.totalorder %s2332_s2, %s1717_s25  ;;  %s47_s22 = int_to_ptr.vmem [resolvable:$true] %s46_s22 }
   0x9   :  { %p1721_p1 = scmp.lt.u32.totalorder %s1717_s25, %s2332_s2 }
   0xb   :  { %p1723_p2 = pnand %p1721_p1, %p1718_p0 }
   0xd   :  { %1726 = shalt.err (!%p1723_p2)
}
   0xe   :  { %s1727_s30 = scalar_lea.vmem %s47_s22, 32  ;;  %p1732_p4 = scmp.lt.s32.totalorder %s47_s22, %s47_s22 }
   0xf   :  { %p1728_p3 = scmp.ne.s32.totalorder %s47_s22, %s1727_s30  ;;  %p1733_p5 = scmp.lt.s32.totalorder %s1727_s30, %s1727_s30 }
  0x11   :  { %p1734_p6 = por %p1733_p5, %p1732_p4 }
  0x13   :  { %p1735_p7 = pnand %p1734_p6, %p1728_p3 }
  0x15   :  { %1738 = shalt.err (!%p1735_p7)
}
  0x16   :  { %s1928_s0 = smov 16   ;;  %s1929_s17 = smov 1  }
  0x17   :  { %52 = dma.hbm_to_vmem [thread:$0]  %s2332_s2, 32, %s47_s22, [#allocation6], %s1928_s0, %s1928_s0, %s1929_s17  }
  0x18   :  { %s1930_s20 = smov [#allocation8]   ;;  %s1739_s25 = scalar_lea.hbm %s2334_s4, 2048 }
  0x19   :  { %s70_s21 = sshll.u32 %s1930_s20, 4  ;;  %p1740_p8 = scmp.ne.s32.totalorder %s2334_s4, %s1739_s25  ;;  %s71_s21 = int_to_ptr.vmem [resolvable:$true] %s70_s21 }
  0x1a   :  { %p1743_p9 = scmp.lt.u32.totalorder %s1739_s25, %s2334_s4 }
  0x1c   :  { %p1745_p10 = pnand %p1743_p9, %p1740_p8 }
  0x1e   :  { %1748 = shalt.err (!%p1745_p10)
}
  0x1f   :  { %s1749_s30 = scalar_lea.vmem %s71_s21, 2048  ;;  %p1754_p12 = scmp.lt.s32.totalorder %s71_s21, %s71_s21 }
  0x20   :  { %p1750_p11 = scmp.ne.s32.totalorder %s71_s21, %s1749_s30  ;;  %p1755_p13 = scmp.lt.s32.totalorder %s1749_s30, %s1749_s30 }
  0x22   :  { %p1756_p0 = por %p1755_p13, %p1754_p12 }
  0x24   :  { %p1757_p1 = pnand %p1756_p0, %p1750_p11 }
  0x26   :  { %1760 = shalt.err (!%p1757_p1)
}
  0x27   :  { %s1931_s2 = smov 128   ;;  %s1932_s22 = smov 8  }
  0x28   :  { %76 = dma.hbm_to_vmem [thread:$0]  %s2334_s4, 2048, %s71_s21, [#allocation9], %s1931_s2, %s1931_s2, %s1932_s22  }
  0x29   :  { %s1933_s18 = smov [#allocation11]   ;;  %s1934_s20 = smov [#allocation2]  }
  0x2a   :  { %s94_s19 = sshll.u32 %s1933_s18, 4  ;;  %s32_s23 = sshll.u32 %s1934_s20, 4  ;;  %s95_s19 = int_to_ptr.vmem [resolvable:$true] %s94_s19  ;;  %s2058_s23 = int_to_ptr.vmem [resolvable:$true] %s32_s23 }
  0x2b   :  { %s1761_s26 = scalar_lea.hbm %s2336_s6, 1024 }
  0x2c   :  { %p1762_p2 = scmp.ne.s32.totalorder %s2336_s6, %s1761_s26  ;;  %p1765_p3 = scmp.lt.u32.totalorder %s1761_s26, %s2336_s6 }
  0x2e   :  { %p1767_p4 = pnand %p1765_p3, %p1762_p2 }
  0x30   :  { %1770 = shalt.err (!%p1767_p4)
}
  0x31   :  { %s1771_s4 = scalar_lea.vmem %s95_s19, 1024  ;;  %p1776_p6 = scmp.lt.s32.totalorder %s95_s19, %s95_s19 }
  0x32   :  { %p1772_p5 = scmp.ne.s32.totalorder %s95_s19, %s1771_s4  ;;  %p1777_p7 = scmp.lt.s32.totalorder %s1771_s4, %s1771_s4 }
  0x34   :  { %p1778_p8 = por %p1777_p7, %p1776_p6 }
  0x36   :  { %p1779_p9 = pnand %p1778_p8, %p1772_p5 }
  0x38   :  { %1782 = shalt.err (!%p1779_p9)
}
  0x39   :  { %s2348_s21 = smov 64   ;;  %s1936_s0 = smov 4  }
  0x3a   :  { %100 = dma.hbm_to_vmem [thread:$0]  %s2336_s6, 1024, %s95_s19, [#allocation12], %s2348_s21, %s2348_s21, %s1936_s0  }
  0x3b   :  { %s2351_s25 = sld [smem:[#allocation23_spill]] }
  0x41   :  { %s1783_s26 = scalar_lea.hbm %s2351_s25, 256 }
  0x42   :  { %p1784_p10 = scmp.ne.s32.totalorder %s2351_s25, %s1783_s26  ;;  %p1787_p11 = scmp.lt.u32.totalorder %s1783_s26, %s2351_s25 }
  0x44   :  { %p1789_p12 = pnand %p1787_p11, %p1784_p10 }
  0x46   :  { %1792 = shalt.err (!%p1789_p12)
}
  0x47   :  { %s1793_s4 = scalar_lea.vmem %s2058_s23, 256  ;;  %p1798_p0 = scmp.lt.s32.totalorder %s2058_s23, %s2058_s23 }
  0x48   :  { %p1794_p13 = scmp.ne.s32.totalorder %s2058_s23, %s1793_s4  ;;  %p1799_p1 = scmp.lt.s32.totalorder %s1793_s4, %s1793_s4 }
  0x4a   :  { %p1800_p2 = por %p1799_p1, %p1798_p0 }
  0x4c   :  { %p1801_p3 = pnand %p1800_p2, %p1794_p13 }
  0x4e   :  { %1804 = shalt.err (!%p1801_p3)
}
  0x4f   :  { %38 = dma.hbm_to_vmem [thread:$0]  %s2351_s25, 256, %s2058_s23, [#allocation3], %s1931_s2, %s1931_s2, %s1932_s22  }
  0x50   :  { %s1937_s17 = smov [#allocation7]   ;;  %s1938_s20 = smov [#allocation10]  }
  0x51   :  { %s58_s18 = sshll.u32 %s1937_s17, 4  ;;  %s82_s24 = sshll.u32 %s1938_s20, 4  ;;  %s59_s18 = int_to_ptr.vmem [resolvable:$true] %s58_s18  ;;  %s2095_s24 = int_to_ptr.vmem [resolvable:$true] %s82_s24 }
  0x52   :  { %s1805_s28 = scalar_lea.hbm %s2333_s3, 1024 }
  0x53   :  { %p1806_p4 = scmp.ne.s32.totalorder %s2333_s3, %s1805_s28  ;;  %p1809_p5 = scmp.lt.u32.totalorder %s1805_s28, %s2333_s3 }
  0x55   :  { %p1811_p6 = pnand %p1809_p5, %p1806_p4 }
  0x57   :  { %1814 = shalt.err (!%p1811_p6)
}
  0x58   :  { %s1815_s23 = scalar_lea.vmem %s59_s18, 1024  ;;  %p1820_p8 = scmp.lt.s32.totalorder %s59_s18, %s59_s18 }
  0x59   :  { %p1816_p7 = scmp.ne.s32.totalorder %s59_s18, %s1815_s23  ;;  %p1821_p9 = scmp.lt.s32.totalorder %s1815_s23, %s1815_s23 }
  0x5b   :  { %p1822_p10 = por %p1821_p9, %p1820_p8 }
  0x5d   :  { %p1823_p11 = pnand %p1822_p10, %p1816_p7 }
  0x5f   :  { %1826 = shalt.err (!%p1823_p11)
}
  0x60   :  { %s2352_s25 = smov 64   ;;  %s1827_s21 = scalar_lea.hbm %s2335_s5, 1024 }
  0x61   :  { %64 = dma.hbm_to_vmem [thread:$0]  %s2333_s3, 1024, %s59_s18, [#allocation6], %s2352_s25, %s2352_s25, %s1936_s0  }
  0x62   :  { %p1828_p12 = scmp.ne.s32.totalorder %s2335_s5, %s1827_s21  ;;  %p1831_p13 = scmp.lt.u32.totalorder %s1827_s21, %s2335_s5 }
  0x64   :  { %p1833_p0 = pnand %p1831_p13, %p1828_p12 }
  0x66   :  { %1836 = shalt.err (!%p1833_p0)
}
  0x67   :  { %s1837_s30 = scalar_lea.vmem %s2095_s24, 1024  ;;  %p1842_p2 = scmp.lt.s32.totalorder %s2095_s24, %s2095_s24 }
  0x68   :  { %p1838_p1 = scmp.ne.s32.totalorder %s2095_s24, %s1837_s30  ;;  %p1843_p3 = scmp.lt.s32.totalorder %s1837_s30, %s1837_s30 }
  0x6a   :  { %p1844_p4 = por %p1843_p3, %p1842_p2 }
  0x6c   :  { %p1845_p5 = pnand %p1844_p4, %p1838_p1 }
  0x6e   :  { %1848 = shalt.err (!%p1845_p5)
}
  0x6f   :  { %88 = dma.hbm_to_vmem [thread:$0]  %s2335_s5, 1024, %s2095_s24, [#allocation9], %s2352_s25, %s2352_s25, %s1936_s0  }
  0x70   :  { %s1939_s4 = smov [#allocation13]   ;;  %s1940_s6 = smov [#allocation14]  }
  0x71   :  { %s106_s23 = sshll.u32 %s1939_s4, 4  ;;  %s118_s19 = sshll.u32 %s1940_s6, 4  ;;  %s107_s23 = int_to_ptr.vmem [resolvable:$true] %s106_s23  ;;  %s2132_s19 = int_to_ptr.vmem [resolvable:$true] %s118_s19 }
  0x72   :  { %s1849_s21 = scalar_lea.hbm %s2337_s7, 1024 }
  0x73   :  { %p1850_p6 = scmp.ne.s32.totalorder %s2337_s7, %s1849_s21  ;;  %p1853_p7 = scmp.lt.u32.totalorder %s1849_s21, %s2337_s7 }
  0x75   :  { %p1855_p8 = pnand %p1853_p7, %p1850_p6 }
  0x77   :  { %1858 = shalt.err (!%p1855_p8)
}
  0x78   :  { %s1859_s5 = scalar_lea.vmem %s107_s23, 1024  ;;  %p1864_p10 = scmp.lt.s32.totalorder %s107_s23, %s107_s23 }
  0x79   :  { %p1860_p9 = scmp.ne.s32.totalorder %s107_s23, %s1859_s5  ;;  %p1865_p11 = scmp.lt.s32.totalorder %s1859_s5, %s1859_s5 }
  0x7b   :  { %p1866_p12 = por %p1865_p11, %p1864_p10 }
  0x7d   :  { %p1867_p13 = pnand %p1866_p12, %p1860_p9 }
  0x7f   :  { %1870 = shalt.err (!%p1867_p13)
}
  0x80   :  { %112 = dma.hbm_to_vmem [thread:$0]  %s2337_s7, 1024, %s107_s23, [#allocation12], %s2352_s25, %s2352_s25, %s1936_s0  }
  0x81   :  { %s1871_s4 = scalar_lea.hbm %s2338_s8, 1024 }
  0x82   :  { %p1872_p0 = scmp.ne.s32.totalorder %s2338_s8, %s1871_s4  ;;  %p1875_p1 = scmp.lt.u32.totalorder %s1871_s4, %s2338_s8 }
  0x84   :  { %p1877_p2 = pnand %p1875_p1, %p1872_p0 }
  0x86   :  { %1880 = shalt.err (!%p1877_p2)
}
  0x87   :  { %s1881_s26 = scalar_lea.vmem %s2132_s19, 1024  ;;  %p1886_p4 = scmp.lt.s32.totalorder %s2132_s19, %s2132_s19 }
  0x88   :  { %p1882_p3 = scmp.ne.s32.totalorder %s2132_s19, %s1881_s26  ;;  %p1887_p5 = scmp.lt.s32.totalorder %s1881_s26, %s1881_s26 }
  0x8a   :  { %p1888_p6 = por %p1887_p5, %p1886_p4 }
  0x8c   :  { %p1889_p7 = pnand %p1888_p6, %p1882_p3 }
  0x8e   :  { %1892 = shalt.err (!%p1889_p7)
}
  0x8f   :  { %124 = dma.hbm_to_vmem [thread:$0]  %s2338_s8, 1024, %s2132_s19, [#allocation15], %s2352_s25, %s2352_s25, %s1936_s0  }
  0x90   :  { %1915 = dma.done.wait [#allocation3], 256  }
  0x91   :  { %1916 = vsyncadd [#allocation3], 4294967040 }
  0x92   :  { %1917 = dma.done.wait [#allocation6], 1056  }
  0x93   :  { %1918 = vsyncadd [#allocation6], 4294966240 }
  0x94   :  { %1919 = dma.done.wait [#allocation9], 3072  }
  0x95   :  { %1920 = vsyncadd [#allocation9], 4294964224 }
  0x96   :  { %1921 = dma.done.wait [#allocation12], 2048  }
  0x97   :  { %1922 = vsyncadd [#allocation12], 4294965248 }
  0x98   :  { %1923 = dma.done.wait [#allocation15], 1024  }
  0x99   :  { %1924 = vsyncadd [#allocation15], 4294966272  ;;  %v1941_v0 = vmov 0.0   ;;  %vm1942_vm0 = vmmov 0   ;;  %v1943_v1 = vmov 0   ;;  %v1639_v2 = vld [vmem:[#allocation7] sm:$0xff]   ;;  %v314_v38 = vlaneseq }
  0x9a   :  { %1476 = vmatprep.subr.bf16.mxu0 %v1941_v0  ;;  %1492 = vmatprep.mubr.msk.bf16.mxu0 %vm1942_vm0, %v1941_v0  ;;  %v1640_v3 = vld [vmem:[#allocation7 + $0x8] sm:$0xff]   ;;  %v1645_v6 = vld [vmem:[#allocation8 + $0x14] ss:$8 sps:$4 sm:$0xff]   ;;  %v1647_v7 = vld [vmem:[#allocation8 + $0x10] ss:$8 sps:$4 sm:$0xff]   ;;  %vm203_vm1 = vcmask 1041409  }
  0x9b   :  { %442 = vmatprep.mubr.bf16.mxu1 %v1943_v1  ;;  %1477 = vmatpush3.bf16.msra.mxu0 %v1639_v2  ;;  %v1641_v4 = vld [vmem:[#allocation8 + $0x4] ss:$8 sps:$4 sm:$0xff]   ;;  %v1643_v5 = vld [vmem:[#allocation8] ss:$8 sps:$4 sm:$0xff]   ;;  %v1644_v8 = vld [vmem:[#allocation7 + $0x10] sm:$0xff]   ;;  %v315_v39 = vshrl.u32 %v314_v38, 7 }
  0x9c   :  { %1478 = vmatprep.subr.bf16.mxu0 %v1941_v0  ;;  %410 = vmatprep.subr.bf16.mxu1 %v1641_v4  ;;  %v1649_v9 = vld [vmem:[#allocation8 + $0x24] ss:$8 sps:$4 sm:$0xff]   ;;  %v1648_v10 = vld [vmem:[#allocation7 + $0x18] sm:$0xff]   ;;  %v1651_v11 = vld [vmem:[#allocation8 + $0x20] ss:$8 sps:$4 sm:$0xff]   ;;  %vm631_vm2 = vcmask 1043456  }
  0x9d   :  { %411 = vmatpush1.bf16.msra.mxu1 %v1643_v5  ;;  %v1653_v12 = vld [vmem:[#allocation8 + $0x34] ss:$8 sps:$4 sm:$0xff]   ;;  %v1655_v13 = vld [vmem:[#allocation8 + $0x30] ss:$8 sps:$4 sm:$0xff]   ;;  %v1652_v14 = vld [vmem:[#allocation7 + $0x20] sm:$0xff]   ;;  %v2198_v42 = vsub.s32 0, %v315_v39 }
  0x9e   :  { %412 = vmatprep.subr.bf16.mxu1 %v1645_v6  ;;  %v1657_v15 = vld [vmem:[#allocation8 + $0x44] ss:$8 sps:$4 sm:$0xff]   ;;  %v1659_v17 = vld [vmem:[#allocation8 + $0x40] ss:$8 sps:$4 sm:$0xff]   ;;  %v1661_v20 = vld [vmem:[#allocation8 + $0x54] ss:$8 sps:$4 sm:$0xff]  }
  0x9f   :  { %1479 = vmatpush3.bf16.msra.mxu0 %v1640_v3  ;;  %v1656_v16 = vld [vmem:[#allocation7 + $0x28] sm:$0xff]   ;;  %v1663_v23 = vld [vmem:[#allocation8 + $0x50] ss:$8 sps:$4 sm:$0xff]   ;;  %v1668_v31 = vld [vmem:[#allocation8 + $0x74] ss:$8 sps:$4 sm:$0xff]   ;;  %v320_v46 = vsub.s32 1, %v315_v39 }
  0xa0   :  { %1480 = vmatprep.subr.bf16.mxu0 %v1941_v0  ;;  %v168_v18 = vld [vmem:[%s2331_s1] sm:$0x1]  ;;  %v169_v19 = vld [vmem:[%s2331_s1 + $0x1] sm:$0x1]  ;;  %v1660_v26 = vld [vmem:[#allocation7 + $0x30] sm:$0xff]   ;;  %vm603_vm3 = vcmask 64512  }
  0xa1   :  { %413 = vmatpush1.bf16.msra.mxu1 %v1647_v7  ;;  %v170_v21 = vpack.c.bf16 %v168_v18, %v168_v18  ;;  %v171_v22 = vpack.c.bf16 %v169_v19, %v169_v19  ;;  %v1665_v24 = vld [vmem:[#allocation8 + $0x64] ss:$8 sps:$4 sm:$0xff]   ;;  %v1667_v29 = vld [vmem:[#allocation8 + $0x60] ss:$8 sps:$4 sm:$0xff]   ;;  %v1664_v30 = vld [vmem:[#allocation7 + $0x38] sm:$0xff]  }
  0xa2   :  { %414 = vmatprep.subr.bf16.mxu1 %v1649_v9  ;;  %v1670_v33 = vld [vmem:[#allocation8 + $0x70] ss:$8 sps:$4 sm:$0xff]   ;;  %v1944_v40 = vmov 1966171168   ;;  %v312_v43 = vld [vmem:[%s2341_s11] sm:$0x3] }
  0xa3   :  { %1481 = vmatpush3.bf16.msra.mxu0 %v1644_v8  ;;  %v201_v25 = vunpack.c.l.b16 %v171_v22  ;;  %v200_v27 = vunpack.c.l.b16 %v170_v21  ;;  %v2186_v34 = vld [vmem:[#allocation2] sm:$0xff]  ;;  %v2188_v35 = vld [vmem:[#allocation2 + $0x8] sm:$0xff]  ;;  %v470_v41 = vunpack.c.l.s4 %v1944_v40  ;;  %v317_v48 = vrot.slane %v312_v43, %v2198_v42  ;;  %v1367_v22 = vld [vmem:[#allocation5] ss:$0 sm:$0xff] }
  0xa4   :  { %1482 = vmatprep.subr.bf16.mxu0 %v1941_v0  ;;  %v1409_v37 = vpack.c.bf16 %v2188_v35, %v2186_v34  ;;  %v1336_v44 = vld [vmem:[%s2340_s10] ss:$0 sm:$0xff]  ;;  %v321_v56 = vrot.slane %v312_v43, %v320_v46 }
  0xa5   :  { %415 = vmatpush1.bf16.msra.mxu1 %v1651_v11  ;;  %v202_v28 = vrot.slane %v201_v25, 7  ;;  %v471_v45 = vunpack.c.0.s8 %v470_v41 }
  0xa6   :  { %416 = vmatprep.subr.bf16.mxu1 %v1653_v12  ;;  %v2220_v12 = vld [vmem:[%s2339_s9] sm:$0xf] }
  0xa7   :  { %1483 = vmatpush3.bf16.msra.mxu0 %v1648_v10  ;;  %v204_v32 = vsel %vm203_vm1, %v202_v28, %v200_v27  ;;  %v2207_v53 = vsub.s32 %v471_v45, %v315_v39 }
  0xa8   :  { %1484 = vmatprep.subr.bf16.mxu0 %v1941_v0  ;;  %v205_v36 = vpack.c.b16 %v204_v32, %v204_v32 }
  0xa9   :  { %417 = vmatpush1.bf16.msra.mxu1 %v1655_v13 }
  0xaa   :  { %418 = vmatprep.subr.bf16.mxu1 %v1657_v15 }
  0xab   :  { %1485 = vmatpush3.bf16.msra.mxu0 %v1652_v14 }
  0xac   :  { %1486 = vmatprep.subr.bf16.mxu0 %v1941_v0 }
  0xad   :  { %419 = vmatpush1.bf16.msra.mxu1 %v1659_v17 }
  0xae   :  { %420 = vmatprep.subr.bf16.mxu1 %v1661_v20 }
  0xaf   :  { %1487 = vmatpush3.bf16.msra.mxu0 %v1656_v16 }
  0xb0   :  { %1488 = vmatprep.subr.bf16.mxu0 %v1941_v0 }
  0xb1   :  { %421 = vmatpush1.bf16.msra.mxu1 %v1663_v23 }
  0xb2   :  { %422 = vmatprep.subr.bf16.mxu1 %v1665_v24 }
  0xb3   :  { %1489 = vmatpush3.bf16.msra.mxu0 %v1660_v26 }
  0xb4   :  { %1490 = vmatprep.subr.bf16.mxu0 %v1941_v0 }
  0xb5   :  { %423 = vmatpush1.bf16.msra.mxu1 %v1667_v29  ;;  %v1368_v29 = vld [vmem:[#allocation5 + $0x1] ss:$0 sm:$0xff] }
  0xb6   :  { %424 = vmatprep.subr.bf16.mxu1 %v1668_v31 }
  0xb7   :  { %1491 = vmatpush3.bf16.msra.mxu0 %v1664_v30 }
  0xb8   :  { %1520 = vmatprep.subr.bf16.mxu0 %v1941_v0 }
  0xb9   :  { %425 = vmatpush1.bf16.msra.mxu1 %v1670_v33 }
  0xba   :  { %1493 = vmatmul.mubr.bf16.vlgmr.msra.gmra.mrb[0].mxu0 %v205_v36  ;;  %1496 = vmatprep.subr.bf16.mxu1 %v1941_v0 }
  0xbb   :  { %1536 = vmatprep.mubr.msk.bf16.mxu0 %vm1942_vm0, %v1941_v0 }
  0xbc   :  { %443 = vmatmul.mubr.bf16.vlgmr.msra.gmra.mrb[0].mxu1 %v1409_v37 }
  0xbd   :  { %1498 = vmatprep.mubr.msk.bf16.mxu1 %vm1942_vm0, %v1941_v0 }
 0x18d   :  { %v289_v47 = vpop.f32.mrb[0].mxu0 }
 0x18e   :  { %v290_v49 = vadd.f32 %v1336_v44, %v289_v47  ;;  %v1494_v50 = vpop.f32.mrb[1].mxu0 }
 0x18f   :  { %v292_v51 = vpop.f32.mrb[2].mxu0  ;;  %v444_v55 = vpop.f32.mrb[0].mxu1 }
 0x190   :  { %v295_v52 = vmul.f32 0.35355338, %v290_v49  ;;  %v1495_v54 = vpop.f32.mrb[3].mxu0  ;;  %v445_v57 = vadd.f32 %v444_v55, %v317_v48  ;;  %v446_v58 = vpop.f32.mrb[1].mxu1  ;;  %v1671_v49 = vld [vmem:[#allocation10] sm:$0xff]  }
 0x191   :  { %v448_v60 = vpop.f32.mrb[2].mxu1  ;;  %v447_v17 = vadd.f32 %v446_v58, %v321_v56  ;;  %1521 = vmatpush3.bf16.msra.mxu0 %v1671_v49 }
 0x192   :  { %v467_v59 = vpack.c.bf16 %v295_v52, %v295_v52  ;;  %v1410_v61 = vpack.c.bf16 %v445_v57, %v445_v57  ;;  %v450_v62 = vpop.f32.mrb[3].mxu1  ;;  %v449_v11 = vadd.f32 %v448_v60, %v317_v48  ;;  %1522 = vmatprep.subr.bf16.mxu0 %v1941_v0  ;;  %v1673_v60 = vld [vmem:[#allocation10 + $0x10] sm:$0xff]  }
 0x193   :  { %v451_v1 = vadd.f32 %v450_v62, %v321_v56  ;;  %v1412_v19 = vpack.c.bf16 %v447_v17, %v447_v17  ;;  %v1675_v62 = vld [vmem:[#allocation10 + $0x20] sm:$0xff]  }
 0x194   :  { %v475_v63 = vrot.slane %v467_v59, %v2207_v53  ;;  %1497 = vmatpush3.bf16.xpose.msra.mxu1 %v1410_v61  ;;  %v1411_v16 = vpack.c.bf16 %v449_v11, %v449_v11  ;;  %v1672_v59 = vld [vmem:[#allocation10 + $0x8] sm:$0xff]   ;;  %v1674_v61 = vld [vmem:[#allocation10 + $0x18] sm:$0xff]  }
 0x195   :  { %v1413_v3 = vpack.c.bf16 %v451_v1, %v451_v1  ;;  %1502 = vmatprep.subr.bf16.mxu1 %v1941_v0  ;;  %v633_v21 = vsel %vm631_vm2, %v1412_v19, 0  ;;  %1523 = vmatpush3.bf16.msra.mxu0 %v1672_v59  ;;  %v1677_v1 = vld [vmem:[#allocation10 + $0x30] sm:$0xff]   ;;  %v1695_v59 = vld [vmem:[#allocation13] sm:$0xff]  }
 0x196   :  { %v482_v2 = vrot.slane %v475_v63, %v2207_v53  ;;  %1524 = vmatprep.subr.bf16.mxu0 %v1941_v0  ;;  %v1676_v63 = vld [vmem:[#allocation10 + $0x28] sm:$0xff]  }
 0x197   :  { %v2213_v6 = vsel %vm631_vm2, %v1413_v3, 0  ;;  %v1679_v3 = vld [vmem:[#allocation11] sm:$0xff]  }
 0x198   :  { %v484_v4 = vunpack.i.h.s16 %v482_v2  ;;  %v1366_v5 = vpack.i.b16 %v482_v2, %v482_v2  ;;  %v1678_v2 = vld [vmem:[#allocation10 + $0x38] sm:$0xff]  }
 0x199   :  { %1525 = vmatpush3.bf16.msra.mxu0 %v1673_v60  ;;  %v1696_v60 = vld [vmem:[#allocation13 + $0x8] sm:$0xff]  }
 0x19a   :  { %v486_v7 = vpack.i.b16 %v484_v4, %v484_v4  ;;  %v490_v8 = vrot.slane %v1366_v5, %v2198_v42  ;;  %1526 = vmatprep.subr.bf16.mxu0 %v1941_v0  ;;  %v1680_v4 = vld [vmem:[#allocation11 + $0x8] sm:$0xff]   ;;  %v1681_v5 = vld [vmem:[#allocation11 + $0x10] sm:$0xff]  }
 0x19c   :  { %v494_v9 = vrot.slane %v486_v7, %v2198_v42  ;;  %v496_v10 = vpack.i.b16 %v490_v8, %v490_v8  ;;  %v1683_v7 = vld [vmem:[#allocation11 + $0x20] sm:$0xff]   ;;  %v1684_v8 = vld [vmem:[#allocation11 + $0x28] sm:$0xff]  }
 0x19d   :  { %1527 = vmatpush3.bf16.msra.mxu0 %v1674_v61  ;;  %v1380_v61 = vld [vmem:[%s2343_s13] ss:$0 sm:$0xff] }
 0x19e   :  { %v501_v13 = vrot.slane %v496_v10, %v2198_v42  ;;  %v503_v14 = vpack.i.b16 %v494_v9, %v494_v9  ;;  %1528 = vmatprep.subr.bf16.mxu0 %v1941_v0  ;;  %v1685_v9 = vld [vmem:[#allocation11 + $0x30] sm:$0xff]   ;;  %v721_v10 = vunpack.c.l.bf16 %v2220_v12 }
 0x1a0   :  { %v509_v15 = vmul.bf16 %v501_v13, %v2220_v12  ;;  %v508_v18 = vrot.slane %v503_v14, %v2198_v42 }
 0x1a1   :  { %1529 = vmatpush3.bf16.msra.mxu0 %v1675_v62 }
 0x1a2   :  { %1499 = vmatmul.mubr.bf16.vlgmr.msra.gmra.mrb[4].mxu1 %v509_v15  ;;  %v510_v20 = vmul.bf16 %v508_v18, %v2220_v12  ;;  %1530 = vmatprep.subr.bf16.mxu0 %v1941_v0 }
 0x1a3   :  { %1503 = vmatpush3.bf16.xpose.msra.mxu1 %v1411_v16  ;;  %1504 = vmatprep.mubr.msk.bf16.mxu1 %vm1942_vm0, %v1941_v0 }
 0x1a4   :  { %1508 = vmatprep.subr.bf16.mxu1 %v1941_v0 }
 0x1a5   :  { %1531 = vmatpush3.bf16.msra.mxu0 %v1676_v63 }
 0x1a6   :  { %1532 = vmatprep.subr.bf16.mxu0 %v1941_v0 }
 0x1a9   :  { %1533 = vmatpush3.bf16.msra.mxu0 %v1677_v1 }
 0x1aa   :  { %1505 = vmatmul.mubr.bf16.vlgmr.msra.gmra.mrb[8].mxu1 %v510_v20  ;;  %1534 = vmatprep.subr.bf16.mxu0 %v1941_v0 }
 0x1ab   :  { %1509 = vmatpush3.bf16.msra.mxu1 %v633_v21  ;;  %1510 = vmatprep.mubr.msk.bf16.mxu1 %vm1942_vm0, %v1941_v0 }
 0x1ac   :  { %1514 = vmatprep.subr.bf16.mxu1 %v1941_v0 }
 0x1ad   :  { %1535 = vmatpush3.bf16.msra.mxu0 %v1678_v2 }
 0x1ae   :  { %1560 = vmatprep.subr.bf16.mxu0 %v1941_v0 }
 0x275   :  { %v557_v23 = vpop.f32.mrb[4].mxu1 }
 0x276   :  { %v558_v24 = vadd.f32 %v1367_v22, %v557_v23  ;;  %v1500_v25 = vpop.f32.mrb[5].mxu1 }
 0x277   :  { %v560_v26 = vpop.f32.mrb[6].mxu1 }
 0x278   :  { %v1501_v27 = vpop.f32.mrb[7].mxu1  ;;  %v604_v28 = vsel %vm603_vm3, %v558_v24, -inf }
 0x279   :  { %605 = vmax.xlane.f32.xlu0 %v604_v28 }
 0x27d   :  { %v597_v30 = vpop.f32.mrb[8].mxu1 }
 0x27e   :  { %v598_v31 = vadd.f32 %v1368_v29, %v597_v30  ;;  %v1506_v32 = vpop.f32.mrb[9].mxu1 }
 0x27f   :  { %v600_v33 = vpop.f32.mrb[10].mxu1 }
 0x280   :  { %v1507_v36 = vpop.f32.mrb[11].mxu1  ;;  %v607_v37 = vsel %vm603_vm3, %v598_v31, -inf }
 0x281   :  { %608 = vmax.xlane.f32.xlu0 %v607_v37 }
 0x306   :  { %v606_v38 = vpop.xlane.xlu0 %605 }
 0x307   :  { %v610_v39 = vsub.f32 %v558_v24, %v606_v38 }
 0x309   :  { %v612_v40 = vmul.f32 1.442695, %v610_v39 }
 0x30b   :  { %1703 = vpow2.f32 %v612_v40 }
 0x30e   :  { %v609_v41 = vpop.xlane.xlu0 %608 }
 0x30f   :  { %v611_v43 = vsub.f32 %v598_v31, %v609_v41  ;;  %v1686_v41 = vld [vmem:[#allocation11 + $0x38] sm:$0xff]  }
 0x311   :  { %v614_v44 = vmul.f32 1.442695, %v611_v43  ;;  %v1371_v43 = vld [vmem:[%s2342_s12] ss:$0 sm:$0xff] }
 0x313   :  { %1705 = vpow2.f32 %v614_v44 }
 0x315   :  { %v1704_v45 = vpop.eup %1703 }
 0x316   :  { %v616_v46 = vsel %vm603_vm3, %v1704_v45, 0.0 }
 0x317   :  { %617 = vadd.xlane.f32.xlu1 %v616_v46 }
 0x31d   :  { %v1706_v47 = vpop.eup %1705 }
 0x31e   :  { %v619_v48 = vsel %vm603_vm3, %v1706_v47, 0.0 }
 0x31f   :  { %620 = vadd.xlane.f32.xlu1 %v619_v48 }
 0x3a4   :  { %v618_v50 = vpop.xlane.xlu1 %617 }
 0x3a5   :  { %1707 = vrcp.f32 %v618_v50  ;;  %v1687_v50 = vld [vmem:[#allocation14] sm:$0xff]  }
 0x3ac   :  { %v621_v51 = vpop.xlane.xlu1 %620 }
 0x3ad   :  { %1709 = vrcp.f32 %v621_v51  ;;  %v1688_v51 = vld [vmem:[#allocation14 + $0x8] sm:$0xff]  }
 0x3af   :  { %v1708_v52 = vpop.eup %1707 }
 0x3b0   :  { %v624_v54 = vmul.f32 %v1708_v52, %v1704_v45  ;;  %v1689_v52 = vld [vmem:[#allocation14 + $0x10] sm:$0xff]  }
 0x3b2   :  { %v626_v55 = vpack.c.bf16 %v624_v54, %v624_v54  ;;  %v1690_v54 = vld [vmem:[#allocation14 + $0x18] sm:$0xff]  }
 0x3b4   :  { %1511 = vmatmul.mubr.msk.bf16.vlgmr.msra.gmra.mrb[12].mxu1 %vm603_vm3, %v626_v55  ;;  %v1691_v55 = vld [vmem:[#allocation14 + $0x20] sm:$0xff]  }
 0x3b5   :  { %1515 = vmatpush3.bf16.msra.mxu1 %v2213_v6  ;;  %1516 = vmatprep.mubr.msk.bf16.mxu1 %vm1942_vm0, %v1941_v0  ;;  %v1682_v6 = vld [vmem:[#allocation11 + $0x18] sm:$0xff]  }
 0x3b6   :  { %1540 = vmatprep.subr.bf16.mxu1 %v1941_v0 }
 0x3b7   :  { %v1710_v56 = vpop.eup %1709 }
 0x3b8   :  { %v625_v57 = vmul.f32 %v1710_v56, %v1706_v47  ;;  %v1692_v56 = vld [vmem:[#allocation14 + $0x28] sm:$0xff]  }
 0x3ba   :  { %v627_v58 = vpack.c.bf16 %v625_v57, %v625_v57  ;;  %v1693_v57 = vld [vmem:[#allocation14 + $0x30] sm:$0xff]  }
 0x3bc   :  { %1517 = vmatmul.mubr.msk.bf16.vlgmr.msra.gmra.mrb[16].mxu1 %vm603_vm3, %v627_v58  ;;  %v1694_v58 = vld [vmem:[#allocation14 + $0x38] sm:$0xff]  }
 0x3bd   :  { %1556 = vmatprep.mubr.msk.bf16.mxu1 %vm1942_vm0, %v1941_v0  ;;  %1541 = vmatpush3.bf16.msra.mxu1 %v1679_v3 }
 0x3be   :  { %1542 = vmatprep.subr.bf16.mxu1 %v1941_v0 }
 0x3c1   :  { %1543 = vmatpush3.bf16.msra.mxu1 %v1680_v4 }
 0x3c2   :  { %1544 = vmatprep.subr.bf16.mxu1 %v1941_v0 }
 0x3c5   :  { %1545 = vmatpush3.bf16.msra.mxu1 %v1681_v5 }
 0x3c6   :  { %1546 = vmatprep.subr.bf16.mxu1 %v1941_v0 }
 0x3c9   :  { %1547 = vmatpush3.bf16.msra.mxu1 %v1682_v6 }
 0x3ca   :  { %1548 = vmatprep.subr.bf16.mxu1 %v1941_v0 }
 0x3cd   :  { %1549 = vmatpush3.bf16.msra.mxu1 %v1683_v7 }
 0x3ce   :  { %1550 = vmatprep.subr.bf16.mxu1 %v1941_v0 }
 0x3d1   :  { %1551 = vmatpush3.bf16.msra.mxu1 %v1684_v8 }
 0x3d2   :  { %1552 = vmatprep.subr.bf16.mxu1 %v1941_v0 }
 0x3d5   :  { %1553 = vmatpush3.bf16.msra.mxu1 %v1685_v9 }
 0x3d6   :  { %1554 = vmatprep.subr.bf16.mxu1 %v1941_v0 }
 0x3d9   :  { %1555 = vmatpush3.bf16.msra.mxu1 %v1686_v41 }
 0x3da   :  { %1580 = vmatprep.subr.bf16.mxu1 %v1941_v0 }
 0x487   :  { %v669_v11 = vpop.f32.mrb[12].mxu1 }
 0x488   :  { %v722_v13 = vmul.f32 %v721_v10, %v669_v11  ;;  %v1512_v14 = vpop.f32.mrb[13].mxu1 }
 0x489   :  { %v672_v15 = vpop.f32.mrb[14].mxu1 }
 0x48a   :  { %v724_v16 = vrot.slane %v722_v13, 4  ;;  %v1513_v17 = vpop.f32.mrb[15].mxu1  ;;  %v1697_v15 = vld [vmem:[#allocation13 + $0x10] sm:$0xff]  }
 0x48b   :  { %v1699_v17 = vld [vmem:[#allocation13 + $0x20] sm:$0xff]  }
 0x48c   :  { %v725_v18 = vadd.f32 %v724_v16, %v722_v13  ;;  %v1698_v16 = vld [vmem:[#allocation13 + $0x18] sm:$0xff]  }
 0x48e   :  { %v726_v19 = vrot.slane %v725_v18, 2 }
 0x48f   :  { %v715_v20 = vpop.f32.mrb[16].mxu1 }
 0x490   :  { %v727_v21 = vadd.f32 %v726_v19, %v725_v18  ;;  %v723_v22 = vmul.f32 %v721_v10, %v715_v20  ;;  %v1518_v23 = vpop.f32.mrb[17].mxu1  ;;  %v1700_v18 = vld [vmem:[#allocation13 + $0x28] sm:$0xff]   ;;  %v1701_v19 = vld [vmem:[#allocation13 + $0x30] sm:$0xff]   ;;  %v1702_v20 = vld [vmem:[#allocation13 + $0x38] sm:$0xff]  }
 0x491   :  { %v718_v24 = vpop.f32.mrb[18].mxu1 }
 0x492   :  { %v730_v25 = vrot.slane %v723_v22, 4  ;;  %v1519_v26 = vpop.f32.mrb[19].mxu1  ;;  %v728_v27 = vrot.slane %v727_v21, 1 }
 0x494   :  { %v731_v28 = vadd.f32 %v730_v25, %v723_v22  ;;  %v729_v30 = vadd.f32 %v728_v27, %v727_v21  ;;  %v1389_v21 = vld [vmem:[%s2345_s15] ss:$0 sm:$0xff] }
 0x496   :  { %v732_v29 = vrot.slane %v731_v28, 2  ;;  %v736_v32 = vpack.c.bf16 %v729_v30, %v729_v30 }
 0x498   :  { %v733_v12 = vadd.f32 %v732_v29, %v731_v28  ;;  %v763_v37 = vunpack.c.l.b16 %v736_v32 }
 0x49a   :  { %v734_v31 = vrot.slane %v733_v12, 1 }
 0x49c   :  { %v735_v33 = vadd.f32 %v734_v31, %v733_v12 }
 0x49e   :  { %v737_v36 = vpack.c.bf16 %v735_v33, %v735_v33 }
 0x4a0   :  { %v764_v38 = vunpack.c.l.b16 %v737_v36  ;;  %v166_v36 = vpack.c.bf16 %v2186_v34, %v2186_v34 }
 0x4a2   :  { %v765_v39 = vsel %vm203_vm1, %v764_v38, %v763_v37  ;;  %v167_v37 = vpack.c.bf16 %v2188_v35, %v2188_v35 }
 0x4a3   :  { %v766_v40 = vpack.c.b16 %v765_v39, %v765_v39 }
 0x4a5   :  { %1537 = vmatmul.mubr.bf16.vlgmr.msra.gmra.mrb[4].mxu0 %v766_v40 }
 0x4a6   :  { %1576 = vmatprep.mubr.msk.bf16.mxu0 %vm1942_vm0, %v1941_v0  ;;  %1561 = vmatpush3.bf16.msra.mxu0 %v1687_v50 }
 0x4a7   :  { %1562 = vmatprep.subr.bf16.mxu0 %v1941_v0 }
 0x4aa   :  { %1563 = vmatpush3.bf16.msra.mxu0 %v1688_v51 }
 0x4ab   :  { %1564 = vmatprep.subr.bf16.mxu0 %v1941_v0 }
 0x4ae   :  { %1565 = vmatpush3.bf16.msra.mxu0 %v1689_v52 }
 0x4af   :  { %1566 = vmatprep.subr.bf16.mxu0 %v1941_v0 }
 0x4b2   :  { %1567 = vmatpush3.bf16.msra.mxu0 %v1690_v54 }
 0x4b3   :  { %1568 = vmatprep.subr.bf16.mxu0 %v1941_v0 }
 0x4b6   :  { %1569 = vmatpush3.bf16.msra.mxu0 %v1691_v55 }
 0x4b7   :  { %1570 = vmatprep.subr.bf16.mxu0 %v1941_v0 }
 0x4ba   :  { %1571 = vmatpush3.bf16.msra.mxu0 %v1692_v56 }
 0x4bb   :  { %1572 = vmatprep.subr.bf16.mxu0 %v1941_v0 }
 0x4be   :  { %1573 = vmatpush3.bf16.msra.mxu0 %v1693_v57 }
 0x4bf   :  { %1574 = vmatprep.subr.bf16.mxu0 %v1941_v0 }
 0x4c2   :  { %1575 = vmatpush3.bf16.msra.mxu0 %v1694_v58 }
 0x4c3   :  { %1600 = vmatprep.subr.bf16.mxu0 %v1941_v0 }
 0x578   :  { %v850_v44 = vpop.f32.mrb[4].mxu0 }
 0x579   :  { %v851_v45 = vadd.f32 %v1371_v43, %v850_v44  ;;  %v1538_v46 = vpop.f32.mrb[5].mxu0  ;;  %v1399_v44 = vld [vmem:[%s2344_s14] ss:$0 sm:$0xff]  ;;  %s1945_s14 = smov [#allocation16]  }
 0x57a   :  { %v853_v47 = vpop.f32.mrb[6].mxu0  ;;  %s1320_s18 = sshll.u32 %s1945_s14, 4  ;;  %s1321_s18 = int_to_ptr.vmem [resolvable:$true] %s1320_s18 }
 0x57b   :  { %v856_v48 = vpack.c.bf16 %v851_v45, %v851_v45  ;;  %v1539_v49 = vpop.f32.mrb[7].mxu0  ;;  %s1893_s4 = scalar_lea.vmem %s1321_s18, 256  ;;  %p1898_p9 = scmp.lt.s32.totalorder %s1321_s18, %s1321_s18 }
 0x57c   :  { %p1894_p8 = scmp.ne.s32.totalorder %s1321_s18, %s1893_s4  ;;  %p1899_p10 = scmp.lt.s32.totalorder %s1893_s4, %s1893_s4 }
 0x57d   :  { %1557 = vmatmul.mubr.bf16.vlgmr.msra.gmra.mrb[20].mxu1 %v856_v48 }
 0x57e   :  { %1596 = vmatprep.mubr.msk.bf16.mxu1 %vm1942_vm0, %v1941_v0  ;;  %1581 = vmatpush3.bf16.msra.mxu1 %v1695_v59  ;;  %p1900_p11 = por %p1899_p10, %p1898_p9 }
 0x57f   :  { %1582 = vmatprep.subr.bf16.mxu1 %v1941_v0 }
 0x580   :  { %p1901_p12 = pnand %p1900_p11, %p1894_p8 }
 0x582   :  { %1583 = vmatpush3.bf16.msra.mxu1 %v1696_v60 }
 0x583   :  { %1584 = vmatprep.subr.bf16.mxu1 %v1941_v0 }
 0x586   :  { %1585 = vmatpush3.bf16.msra.mxu1 %v1697_v15 }
 0x587   :  { %1586 = vmatprep.subr.bf16.mxu1 %v1941_v0 }
 0x58a   :  { %1587 = vmatpush3.bf16.msra.mxu1 %v1698_v16 }
 0x58b   :  { %1588 = vmatprep.subr.bf16.mxu1 %v1941_v0 }
 0x58e   :  { %1589 = vmatpush3.bf16.msra.mxu1 %v1699_v17 }
 0x58f   :  { %1590 = vmatprep.subr.bf16.mxu1 %v1941_v0 }
 0x592   :  { %1591 = vmatpush3.bf16.msra.mxu1 %v1700_v18 }
 0x593   :  { %1592 = vmatprep.subr.bf16.mxu1 %v1941_v0 }
 0x596   :  { %1593 = vmatpush3.bf16.msra.mxu1 %v1701_v19 }
 0x597   :  { %1594 = vmatprep.subr.bf16.mxu1 %v1941_v0 }
 0x59a   :  { %1595 = vmatpush3.bf16.msra.mxu1 %v1702_v20 }
 0x650   :  { %v962_v62 = vpop.f32.mrb[20].mxu1 }
 0x651   :  { %v963_v63 = vadd.f32 %v1380_v61, %v962_v62  ;;  %v1558_v1 = vpop.f32.mrb[21].mxu1 }
 0x652   :  { %v965_v2 = vpop.f32.mrb[22].mxu1 }
 0x653   :  { %v968_v3 = vmul.f32 %v963_v63, %v963_v63  ;;  %v1559_v4 = vpop.f32.mrb[23].mxu1 }
 0x655   :  { %v969_v5 = vmul.f32 %v968_v3, %v963_v63 }
 0x657   :  { %v970_v6 = vmul.f32 0.044715, %v969_v5 }
 0x659   :  { %v971_v7 = vadd.f32 %v970_v6, %v963_v63 }
 0x65b   :  { %v972_v8 = vmul.f32 0.7978846, %v971_v7 }
 0x65d   :  { %1711 = vtanh.f32 %v972_v8 }
 0x667   :  { %v1712_v9 = vpop.eup %1711 }
 0x668   :  { %v974_v10 = vadd.f32 1.0, %v1712_v9 }
 0x66a   :  { %v975_v11 = vmul.f32 0.5, %v974_v10 }
 0x66c   :  { %v976_v13 = vmul.f32 %v975_v11, %v963_v63 }
 0x66e   :  { %v977_v14 = vpack.c.bf16 %v976_v13, %v976_v13 }
 0x670   :  { %1577 = vmatmul.mubr.bf16.vlgmr.msra.gmra.mrb[8].mxu0 %v977_v14 }
 0x671   :  { %1601 = vmatpush3.bf16.msra.mxu0 %v1687_v50  ;;  %1616 = vmatprep.mubr.msk.bf16.mxu0 %vm1942_vm0, %v1941_v0 }
 0x672   :  { %1602 = vmatprep.subr.bf16.mxu0 %v1941_v0 }
 0x675   :  { %1603 = vmatpush3.bf16.msra.mxu0 %v1688_v51 }
 0x676   :  { %1604 = vmatprep.subr.bf16.mxu0 %v1941_v0 }
 0x679   :  { %1605 = vmatpush3.bf16.msra.mxu0 %v1689_v52 }
 0x67a   :  { %1606 = vmatprep.subr.bf16.mxu0 %v1941_v0 }
 0x67d   :  { %1607 = vmatpush3.bf16.msra.mxu0 %v1690_v54 }
 0x67e   :  { %1608 = vmatprep.subr.bf16.mxu0 %v1941_v0 }
 0x681   :  { %1609 = vmatpush3.bf16.msra.mxu0 %v1691_v55 }
 0x682   :  { %1610 = vmatprep.subr.bf16.mxu0 %v1941_v0 }
 0x685   :  { %1611 = vmatpush3.bf16.msra.mxu0 %v1692_v56 }
 0x686   :  { %1612 = vmatprep.subr.bf16.mxu0 %v1941_v0 }
 0x689   :  { %1613 = vmatpush3.bf16.msra.mxu0 %v1693_v57 }
 0x68a   :  { %1614 = vmatprep.subr.bf16.mxu0 %v1941_v0 }
 0x68d   :  { %1615 = vmatpush3.bf16.msra.mxu0 %v1694_v58 }
 0x743   :  { %v1083_v22 = vpop.f32.mrb[8].mxu0 }
 0x744   :  { %v1084_v23 = vadd.f32 %v1389_v21, %v1083_v22  ;;  %v1578_v24 = vpop.f32.mrb[9].mxu0 }
 0x745   :  { %v1086_v25 = vpop.f32.mrb[10].mxu0 }
 0x746   :  { %v1089_v26 = vpack.c.bf16 %v1084_v23, %v1084_v23  ;;  %v1579_v27 = vpop.f32.mrb[11].mxu0 }
 0x748   :  { %v1097_v28 = vrot.slane %v1089_v26, %v2207_v53 }
 0x74a   :  { %v1104_v29 = vrot.slane %v1097_v28, %v2207_v53 }
 0x74c   :  { %v1106_v30 = vunpack.i.h.s16 %v1104_v29  ;;  %v1398_v12 = vpack.i.b16 %v1104_v29, %v1104_v29 }
 0x74e   :  { %v1108_v31 = vpack.i.b16 %v1106_v30, %v1106_v30  ;;  %v1112_v0 = vrot.slane %v1398_v12, %v2198_v42 }
 0x750   :  { %v1116_v32 = vrot.slane %v1108_v31, %v2198_v42  ;;  %v1118_v33 = vpack.i.b16 %v1112_v0, %v1112_v0 }
 0x752   :  { %v1125_v38 = vpack.i.b16 %v1116_v32, %v1116_v32  ;;  %v1123_v39 = vrot.slane %v1118_v33, %v2198_v42 }
 0x754   :  { %v1130_v40 = vrot.slane %v1125_v38, %v2198_v42  ;;  %v1131_v53 = vadd.bf16 %v1123_v39, %v166_v36 }
 0x756   :  { %v1132_v41 = vadd.bf16 %v1130_v40, %v167_v37 }
 0x758   :  { %v1400_v43 = vcombine.low %v1131_v53, %v1132_v41 }
 0x75a   :  { %1597 = vmatmul.mubr.bf16.vlgmr.msra.gmra.mrb[24].mxu1 %v1400_v43 }
 0x82d   :  { %v1244_v45 = vpop.f32.mrb[24].mxu1 }
 0x82e   :  { %v1245_v46 = vadd.f32 %v1399_v44, %v1244_v45  ;;  %v1598_v47 = vpop.f32.mrb[25].mxu1 }
 0x82f   :  { %v1247_v48 = vpop.f32.mrb[26].mxu1 }
 0x830   :  { %v1251_v49 = vmul.f32 %v1245_v46, %v1245_v46  ;;  %v1248_v50 = vadd.f32 %v1399_v44, %v1247_v48  ;;  %v1599_v51 = vpop.f32.mrb[27].mxu1 }
 0x832   :  { %v1253_v52 = vmul.f32 %v1251_v49, %v1245_v46  ;;  %v1252_v54 = vmul.f32 %v1248_v50, %v1248_v50 }
 0x834   :  { %v1255_v55 = vmul.f32 0.044715, %v1253_v52  ;;  %v1254_v56 = vmul.f32 %v1252_v54, %v1248_v50 }
 0x836   :  { %v1257_v42 = vadd.f32 %v1255_v55, %v1245_v46  ;;  %v1256_v57 = vmul.f32 0.044715, %v1254_v56 }
 0x838   :  { %v1259_v58 = vmul.f32 0.7978846, %v1257_v42  ;;  %v1258_v59 = vadd.f32 %v1256_v57, %v1248_v50 }
 0x83a   :  { %1713 = vtanh.f32 %v1259_v58  ;;  %v1260_v60 = vmul.f32 0.7978846, %v1258_v59 }
 0x83c   :  { %1715 = vtanh.f32 %v1260_v60 }
 0x844   :  { %v1714_v61 = vpop.eup %1713 }
 0x845   :  { %v1263_v62 = vadd.f32 1.0, %v1714_v61 }
 0x846   :  { %v1716_v63 = vpop.eup %1715 }
 0x847   :  { %v1265_v1 = vmul.f32 0.5, %v1263_v62  ;;  %v1264_v2 = vadd.f32 1.0, %v1716_v63 }
 0x849   :  { %v1266_v3 = vmul.f32 0.5, %v1264_v2  ;;  %v1267_v4 = vmul.f32 %v1265_v1, %v1245_v46 }
 0x84b   :  { %v1268_v5 = vmul.f32 %v1266_v3, %v1248_v50 }
 0x84d   :  { %v1269_v6 = vpack.c.bf16 %v1268_v5, %v1267_v4 }
 0x84f   :  { %1617 = vmatmul.mubr.bf16.vlgmr.msra.gmra.mrb[12].mxu0 %v1269_v6 }
 0x922   :  { %v1304_v7 = vpop.f32.mrb[12].mxu0 }
 0x923   :  { %v1305_v8 = vadd.f32 %v1389_v21, %v1304_v7  ;;  %v1618_v9 = vpop.f32.mrb[13].mxu0 }
 0x924   :  { %v1307_v10 = vpop.f32.mrb[14].mxu0 }
 0x925   :  { %v1311_v11 = vadd.f32 %v1305_v8, %v2186_v34  ;;  %v1308_v13 = vadd.f32 %v1389_v21, %v1307_v10  ;;  %v1619_v14 = vpop.f32.mrb[15].mxu0 }
 0x927   :  { %1313 = vst [vmem:[#allocation16] sm:$0xff] %v1311_v11  ;;  %v1312_v15 = vadd.f32 %v1308_v13, %v2188_v35 }
 0x929   :  { %1314 = vst [vmem:[#allocation16 + $0x8] sm:$0xff] %v1312_v15 }
 0x92a   :  { %1904 = shalt.err (!%p1901_p12)
}
 0x92b   :  { %s1905_s20 = scalar_lea.hbm %s2346_s16, 256 }
 0x92c   :  { %p1906_p13 = scmp.ne.s32.totalorder %s2346_s16, %s1905_s20  ;;  %p1909_p0 = scmp.lt.u32.totalorder %s1905_s20, %s2346_s16 }
 0x92e   :  { %p1911_p1 = pnand %p1909_p0, %p1906_p13 }
 0x930   :  { %1914 = shalt.err (!%p1911_p1)
}
 0x931   :  { %1326 = dma.vmem_to_hbm [thread:$0]  %s1321_s18, 256, %s2346_s16, [#allocation4], %s1931_s2, %s1931_s2, %s1932_s22  }
 0x932   :  { %1925 = dma.done.wait [#allocation4], 256  }
 0x933   :  { %1926 = vsyncadd [#allocation4], 4294967040 }
 0x934   :  { %1330 = vsyncpa [#allocation3], 1 }
 0x935   :  { %1331 = vsyncpa [#allocation6], 1 }
 0x936   :  { %1332 = vsyncpa [#allocation9], 1 }
 0x937   :  { %1333 = vsyncpa [#allocation12], 1 }
 0x938   :  { %1334 = vsyncpa [#allocation15], 1 }
 0x939   :  { %1335 = vsyncpa [#allocation4], 1 }

// kernel: tpu_custom_call.1
= control target key start
LH: loop header
LB: loop body
LE: loop exit
PB: predicated region body
PF: predicated region fallthrough
CT: control target
= control target key end

     0   :  { %s2330_s0 = inlined_call_operand.hbm [shape: f32[2,8,128], index: 0, kind: input, shape index: {}]   ;;  %s2331_s1 = inlined_call_operand.vmem [shape: f32[2,1,128], index: 1, kind: input, shape index: {}]   ;;  %s2332_s2 = inlined_call_operand.hbm [shape: f32[2,1,8], index: 2, kind: input, shape index: {}]   ;;  %s2333_s3 = inlined_call_operand.hbm [shape: bf16[128,128], index: 3, kind: input, shape index: {}]   ;;  %s2334_s4 = inlined_call_operand.hbm [shape: bf16[128,256], index: 4, kind: input, shape index: {}]   ;;  %s2335_s5 = inlined_call_operand.hbm [shape: bf16[128,128], index: 5, kind: input, shape index: {}]   ;;  %s2336_s6 = inlined_call_operand.hbm [shape: bf16[128,128], index: 6, kind: input, shape index: {}]   ;;  %s2337_s7 = inlined_call_operand.hbm [shape: bf16[128,128], index: 7, kind: input, shape index: {}]   ;;  %s2338_s8 = inlined_call_operand.hbm [shape: bf16[128,128], index: 8, kind: input, shape index: {}]   ;;  %s2339_s9 = inlined_call_operand.vmem [shape: bf16[8,128], index: 9, kind: input, shape index: {}]   ;;  %s2340_s10 = inlined_call_operand.vmem [shape: f32[1,128], index: 10, kind: input, shape index: {}]   ;;  %s2341_s11 = inlined_call_operand.vmem [shape: f32[1,256], index: 11, kind: input, shape index: {}]   ;;  %s2342_s12 = inlined_call_operand.vmem [shape: f32[1,128], index: 12, kind: input, shape index: {}]   ;;  %s2343_s13 = inlined_call_operand.vmem [shape: f32[1,128], index: 13, kind: input, shape index: {}]   ;;  %s2344_s14 = inlined_call_operand.vmem [shape: f32[1,128], index: 14, kind: input, shape index: {}]   ;;  %s2345_s15 = inlined_call_operand.vmem [shape: f32[1,128], index: 15, kind: input, shape index: {}]   ;;  %s2346_s16 = inlined_call_operand.hbm [shape: f32[2,8,128], index: 16, kind: output, shape index: {}]  }
   0x1   :  { %2350 = sst [smem:[#allocation23_spill]] %s2330_s0 }
   0x2   :  { %21 = vsyncpa [#allocation3], 0 }
   0x3   :  { %22 = vsyncpa [#allocation6], 0 }
   0x4   :  { %23 = vsyncpa [#allocation9], 0 }
   0x5   :  { %24 = vsyncpa [#allocation12], 0 }
   0x6   :  { %25 = vsyncpa [#allocation15], 0 }
   0x7   :  { %26 = vsyncpa [#allocation4], 0  ;;  %s1927_s21 = smov [#allocation5]   ;;  %s1717_s25 = scalar_lea.hbm %s2332_s2, 32 }
   0x8   :  { %s46_s22 = sshll.u32 %s1927_s21, 4  ;;  %p1718_p0 = scmp.ne.s32.totalorder %s2332_s2, %s1717_s25  ;;  %s47_s22 = int_to_ptr.vmem [resolvable:$true] %s46_s22 }
   0x9   :  { %p1721_p1 = scmp.lt.u32.totalorder %s1717_s25, %s2332_s2 }
   0xb   :  { %p1723_p2 = pnand %p1721_p1, %p1718_p0 }
   0xd   :  { %1726 = shalt.err (!%p1723_p2)
}
   0xe   :  { %s1727_s30 = scalar_lea.vmem %s47_s22, 32  ;;  %p1732_p4 = scmp.lt.s32.totalorder %s47_s22, %s47_s22 }
   0xf   :  { %p1728_p3 = scmp.ne.s32.totalorder %s47_s22, %s1727_s30  ;;  %p1733_p5 = scmp.lt.s32.totalorder %s1727_s30, %s1727_s30 }
  0x11   :  { %p1734_p6 = por %p1733_p5, %p1732_p4 }
  0x13   :  { %p1735_p7 = pnand %p1734_p6, %p1728_p3 }
  0x15   :  { %1738 = shalt.err (!%p1735_p7)
}
  0x16   :  { %s1928_s0 = smov 16   ;;  %s1929_s17 = smov 1  }
  0x17   :  { %52 = dma.hbm_to_vmem [thread:$0]  %s2332_s2, 32, %s47_s22, [#allocation6], %s1928_s0, %s1928_s0, %s1929_s17  }
  0x18   :  { %s1930_s20 = smov [#allocation8]   ;;  %s1739_s25 = scalar_lea.hbm %s2334_s4, 2048 }
  0x19   :  { %s70_s21 = sshll.u32 %s1930_s20, 4  ;;  %p1740_p8 = scmp.ne.s32.totalorder %s2334_s4, %s1739_s25  ;;  %s71_s21 = int_to_ptr.vmem [resolvable:$true] %s70_s21 }
  0x1a   :  { %p1743_p9 = scmp.lt.u32.totalorder %s1739_s25, %s2334_s4 }
  0x1c   :  { %p1745_p10 = pnand %p1743_p9, %p1740_p8 }
  0x1e   :  { %1748 = shalt.err (!%p1745_p10)
}
  0x1f   :  { %s1749_s30 = scalar_lea.vmem %s71_s21, 2048  ;;  %p1754_p12 = scmp.lt.s32.totalorder %s71_s21, %s71_s21 }
  0x20   :  { %p1750_p11 = scmp.ne.s32.totalorder %s71_s21, %s1749_s30  ;;  %p1755_p13 = scmp.lt.s32.totalorder %s1749_s30, %s1749_s30 }
  0x22   :  { %p1756_p0 = por %p1755_p13, %p1754_p12 }
  0x24   :  { %p1757_p1 = pnand %p1756_p0, %p1750_p11 }
  0x26   :  { %1760 = shalt.err (!%p1757_p1)
}
  0x27   :  { %s1931_s2 = smov 128   ;;  %s1932_s22 = smov 8  }
  0x28   :  { %76 = dma.hbm_to_vmem [thread:$0]  %s2334_s4, 2048, %s71_s21, [#allocation9], %s1931_s2, %s1931_s2, %s1932_s22  }
  0x29   :  { %s1933_s18 = smov [#allocation11]   ;;  %s1934_s20 = smov [#allocation2]  }
  0x2a   :  { %s94_s19 = sshll.u32 %s1933_s18, 4  ;;  %s32_s23 = sshll.u32 %s1934_s20, 4  ;;  %s95_s19 = int_to_ptr.vmem [resolvable:$true] %s94_s19  ;;  %s2058_s23 = int_to_ptr.vmem [resolvable:$true] %s32_s23 }
  0x2b   :  { %s1761_s26 = scalar_lea.hbm %s2336_s6, 1024 }
  0x2c   :  { %p1762_p2 = scmp.ne.s32.totalorder %s2336_s6, %s1761_s26  ;;  %p1765_p3 = scmp.lt.u32.totalorder %s1761_s26, %s2336_s6 }
  0x2e   :  { %p1767_p4 = pnand %p1765_p3, %p1762_p2 }
  0x30   :  { %1770 = shalt.err (!%p1767_p4)
}
  0x31   :  { %s1771_s4 = scalar_lea.vmem %s95_s19, 1024  ;;  %p1776_p6 = scmp.lt.s32.totalorder %s95_s19, %s95_s19 }
  0x32   :  { %p1772_p5 = scmp.ne.s32.totalorder %s95_s19, %s1771_s4  ;;  %p1777_p7 = scmp.lt.s32.totalorder %s1771_s4, %s1771_s4 }
  0x34   :  { %p1778_p8 = por %p1777_p7, %p1776_p6 }
  0x36   :  { %p1779_p9 = pnand %p1778_p8, %p1772_p5 }
  0x38   :  { %1782 = shalt.err (!%p1779_p9)
}
  0x39   :  { %s2348_s21 = smov 64   ;;  %s1936_s0 = smov 4  }
  0x3a   :  { %100 = dma.hbm_to_vmem [thread:$0]  %s2336_s6, 1024, %s95_s19, [#allocation12], %s2348_s21, %s2348_s21, %s1936_s0  }
  0x3b   :  { %s2351_s25 = sld [smem:[#allocation23_spill]] }
  0x41   :  { %s1783_s26 = scalar_lea.hbm %s2351_s25, 256 }
  0x42   :  { %p1784_p10 = scmp.ne.s32.totalorder %s2351_s25, %s1783_s26  ;;  %p1787_p11 = scmp.lt.u32.totalorder %s1783_s26, %s2351_s25 }
  0x44   :  { %p1789_p12 = pnand %p1787_p11, %p1784_p10 }
  0x46   :  { %1792 = shalt.err (!%p1789_p12)
}
  0x47   :  { %s1793_s4 = scalar_lea.vmem %s2058_s23, 256  ;;  %p1798_p0 = scmp.lt.s32.totalorder %s2058_s23, %s2058_s23 }
  0x48   :  { %p1794_p13 = scmp.ne.s32.totalorder %s2058_s23, %s1793_s4  ;;  %p1799_p1 = scmp.lt.s32.totalorder %s1793_s4, %s1793_s4 }
  0x4a   :  { %p1800_p2 = por %p1799_p1, %p1798_p0 }
  0x4c   :  { %p1801_p3 = pnand %p1800_p2, %p1794_p13 }
  0x4e   :  { %1804 = shalt.err (!%p1801_p3)
}
  0x4f   :  { %38 = dma.hbm_to_vmem [thread:$0]  %s2351_s25, 256, %s2058_s23, [#allocation3], %s1931_s2, %s1931_s2, %s1932_s22  }
  0x50   :  { %s1937_s17 = smov [#allocation7]   ;;  %s1938_s20 = smov [#allocation10]  }
  0x51   :  { %s58_s18 = sshll.u32 %s1937_s17, 4  ;;  %s82_s24 = sshll.u32 %s1938_s20, 4  ;;  %s59_s18 = int_to_ptr.vmem [resolvable:$true] %s58_s18  ;;  %s2095_s24 = int_to_ptr.vmem [resolvable:$true] %s82_s24 }
  0x52   :  { %s1805_s28 = scalar_lea.hbm %s2333_s3, 1024 }
  0x53   :  { %p1806_p4 = scmp.ne.s32.totalorder %s2333_s3, %s1805_s28  ;;  %p1809_p5 = scmp.lt.u32.totalorder %s1805_s28, %s2333_s3 }
  0x55   :  { %p1811_p6 = pnand %p1809_p5, %p1806_p4 }
  0x57   :  { %1814 = shalt.err (!%p1811_p6)
}
  0x58   :  { %s1815_s23 = scalar_lea.vmem %s59_s18, 1024  ;;  %p1820_p8 = scmp.lt.s32.totalorder %s59_s18, %s59_s18 }
  0x59   :  { %p1816_p7 = scmp.ne.s32.totalorder %s59_s18, %s1815_s23  ;;  %p1821_p9 = scmp.lt.s32.totalorder %s1815_s23, %s1815_s23 }
  0x5b   :  { %p1822_p10 = por %p1821_p9, %p1820_p8 }
  0x5d   :  { %p1823_p11 = pnand %p1822_p10, %p1816_p7 }
  0x5f   :  { %1826 = shalt.err (!%p1823_p11)
}
  0x60   :  { %s2352_s25 = smov 64   ;;  %s1827_s21 = scalar_lea.hbm %s2335_s5, 1024 }
  0x61   :  { %64 = dma.hbm_to_vmem [thread:$0]  %s2333_s3, 1024, %s59_s18, [#allocation6], %s2352_s25, %s2352_s25, %s1936_s0  }
  0x62   :  { %p1828_p12 = scmp.ne.s32.totalorder %s2335_s5, %s1827_s21  ;;  %p1831_p13 = scmp.lt.u32.totalorder %s1827_s21, %s2335_s5 }
  0x64   :  { %p1833_p0 = pnand %p1831_p13, %p1828_p12 }
  0x66   :  { %1836 = shalt.err (!%p1833_p0)
}
  0x67   :  { %s1837_s30 = scalar_lea.vmem %s2095_s24, 1024  ;;  %p1842_p2 = scmp.lt.s32.totalorder %s2095_s24, %s2095_s24 }
  0x68   :  { %p1838_p1 = scmp.ne.s32.totalorder %s2095_s24, %s1837_s30  ;;  %p1843_p3 = scmp.lt.s32.totalorder %s1837_s30, %s1837_s30 }
  0x6a   :  { %p1844_p4 = por %p1843_p3, %p1842_p2 }
  0x6c   :  { %p1845_p5 = pnand %p1844_p4, %p1838_p1 }
  0x6e   :  { %1848 = shalt.err (!%p1845_p5)
}
  0x6f   :  { %88 = dma.hbm_to_vmem [thread:$0]  %s2335_s5, 1024, %s2095_s24, [#allocation9], %s2352_s25, %s2352_s25, %s1936_s0  }
  0x70   :  { %s1939_s4 = smov [#allocation13]   ;;  %s1940_s6 = smov [#allocation14]  }
  0x71   :  { %s106_s23 = sshll.u32 %s1939_s4, 4  ;;  %s118_s19 = sshll.u32 %s1940_s6, 4  ;;  %s107_s23 = int_to_ptr.vmem [resolvable:$true] %s106_s23  ;;  %s2132_s19 = int_to_ptr.vmem [resolvable:$true] %s118_s19 }
  0x72   :  { %s1849_s21 = scalar_lea.hbm %s2337_s7, 1024 }
  0x73   :  { %p1850_p6 = scmp.ne.s32.totalorder %s2337_s7, %s1849_s21  ;;  %p1853_p7 = scmp.lt.u32.totalorder %s1849_s21, %s2337_s7 }
  0x75   :  { %p1855_p8 = pnand %p1853_p7, %p1850_p6 }
  0x77   :  { %1858 = shalt.err (!%p1855_p8)
}
  0x78   :  { %s1859_s5 = scalar_lea.vmem %s107_s23, 1024  ;;  %p1864_p10 = scmp.lt.s32.totalorder %s107_s23, %s107_s23 }
  0x79   :  { %p1860_p9 = scmp.ne.s32.totalorder %s107_s23, %s1859_s5  ;;  %p1865_p11 = scmp.lt.s32.totalorder %s1859_s5, %s1859_s5 }
  0x7b   :  { %p1866_p12 = por %p1865_p11, %p1864_p10 }
  0x7d   :  { %p1867_p13 = pnand %p1866_p12, %p1860_p9 }
  0x7f   :  { %1870 = shalt.err (!%p1867_p13)
}
  0x80   :  { %112 = dma.hbm_to_vmem [thread:$0]  %s2337_s7, 1024, %s107_s23, [#allocation12], %s2352_s25, %s2352_s25, %s1936_s0  }
  0x81   :  { %s1871_s4 = scalar_lea.hbm %s2338_s8, 1024 }
  0x82   :  { %p1872_p0 = scmp.ne.s32.totalorder %s2338_s8, %s1871_s4  ;;  %p1875_p1 = scmp.lt.u32.totalorder %s1871_s4, %s2338_s8 }
  0x84   :  { %p1877_p2 = pnand %p1875_p1, %p1872_p0 }
  0x86   :  { %1880 = shalt.err (!%p1877_p2)
}
  0x87   :  { %s1881_s26 = scalar_lea.vmem %s2132_s19, 1024  ;;  %p1886_p4 = scmp.lt.s32.totalorder %s2132_s19, %s2132_s19 }
  0x88   :  { %p1882_p3 = scmp.ne.s32.totalorder %s2132_s19, %s1881_s26  ;;  %p1887_p5 = scmp.lt.s32.totalorder %s1881_s26, %s1881_s26 }
  0x8a   :  { %p1888_p6 = por %p1887_p5, %p1886_p4 }
  0x8c   :  { %p1889_p7 = pnand %p1888_p6, %p1882_p3 }
  0x8e   :  { %1892 = shalt.err (!%p1889_p7)
}
  0x8f   :  { %124 = dma.hbm_to_vmem [thread:$0]  %s2338_s8, 1024, %s2132_s19, [#allocation15], %s2352_s25, %s2352_s25, %s1936_s0  }
  0x90   :  { %1915 = dma.done.wait [#allocation3], 256  }
  0x91   :  { %1916 = vsyncadd [#allocation3], 4294967040 }
  0x92   :  { %1917 = dma.done.wait [#allocation6], 1056  }
  0x93   :  { %1918 = vsyncadd [#allocation6], 4294966240 }
  0x94   :  { %1919 = dma.done.wait [#allocation9], 3072  }
  0x95   :  { %1920 = vsyncadd [#allocation9], 4294964224 }
  0x96   :  { %1921 = dma.done.wait [#allocation12], 2048  }
  0x97   :  { %1922 = vsyncadd [#allocation12], 4294965248 }
  0x98   :  { %1923 = dma.done.wait [#allocation15], 1024  }
  0x99   :  { %1924 = vsyncadd [#allocation15], 4294966272  ;;  %v1941_v0 = vmov 0.0   ;;  %vm1942_vm0 = vmmov 0   ;;  %v1943_v1 = vmov 0   ;;  %v1639_v2 = vld [vmem:[#allocation7] sm:$0xff]   ;;  %v314_v38 = vlaneseq }
  0x9a   :  { %1476 = vmatprep.subr.bf16.mxu0 %v1941_v0  ;;  %1492 = vmatprep.mubr.msk.bf16.mxu0 %vm1942_vm0, %v1941_v0  ;;  %v1640_v3 = vld [vmem:[#allocation7 + $0x8] sm:$0xff]   ;;  %v1645_v6 = vld [vmem:[#allocation8 + $0x14] ss:$8 sps:$4 sm:$0xff]   ;;  %v1647_v7 = vld [vmem:[#allocation8 + $0x10] ss:$8 sps:$4 sm:$0xff]   ;;  %vm203_vm1 = vcmask 1041409  }
  0x9b   :  { %442 = vmatprep.mubr.bf16.mxu1 %v1943_v1  ;;  %1477 = vmatpush3.bf16.msra.mxu0 %v1639_v2  ;;  %v1641_v4 = vld [vmem:[#allocation8 + $0x4] ss:$8 sps:$4 sm:$0xff]   ;;  %v1643_v5 = vld [vmem:[#allocation8] ss:$8 sps:$4 sm:$0xff]   ;;  %v1644_v8 = vld [vmem:[#allocation7 + $0x10] sm:$0xff]   ;;  %v315_v39 = vshrl.u32 %v314_v38, 7 }
  0x9c   :  { %1478 = vmatprep.subr.bf16.mxu0 %v1941_v0  ;;  %410 = vmatprep.subr.bf16.mxu1 %v1641_v4  ;;  %v1649_v9 = vld [vmem:[#allocation8 + $0x24] ss:$8 sps:$4 sm:$0xff]   ;;  %v1648_v10 = vld [vmem:[#allocation7 + $0x18] sm:$0xff]   ;;  %v1651_v11 = vld [vmem:[#allocation8 + $0x20] ss:$8 sps:$4 sm:$0xff]   ;;  %vm631_vm2 = vcmask 1043456  }
  0x9d   :  { %411 = vmatpush1.bf16.msra.mxu1 %v1643_v5  ;;  %v1653_v12 = vld [vmem:[#allocation8 + $0x34] ss:$8 sps:$4 sm:$0xff]   ;;  %v1655_v13 = vld [vmem:[#allocation8 + $0x30] ss:$8 sps:$4 sm:$0xff]   ;;  %v1652_v14 = vld [vmem:[#allocation7 + $0x20] sm:$0xff]   ;;  %v2198_v42 = vsub.s32 0, %v315_v39 }
  0x9e   :  { %412 = vmatprep.subr.bf16.mxu1 %v1645_v6  ;;  %v1657_v15 = vld [vmem:[#allocation8 + $0x44] ss:$8 sps:$4 sm:$0xff]   ;;  %v1659_v17 = vld [vmem:[#allocation8 + $0x40] ss:$8 sps:$4 sm:$0xff]   ;;  %v1661_v20 = vld [vmem:[#allocation8 + $0x54] ss:$8 sps:$4 sm:$0xff]  }
  0x9f   :  { %1479 = vmatpush3.bf16.msra.mxu0 %v1640_v3  ;;  %v1656_v16 = vld [vmem:[#allocation7 + $0x28] sm:$0xff]   ;;  %v1663_v23 = vld [vmem:[#allocation8 + $0x50] ss:$8 sps:$4 sm:$0xff]   ;;  %v1668_v31 = vld [vmem:[#allocation8 + $0x74] ss:$8 sps:$4 sm:$0xff]   ;;  %v320_v46 = vsub.s32 1, %v315_v39 }
  0xa0   :  { %1480 = vmatprep.subr.bf16.mxu0 %v1941_v0  ;;  %v168_v18 = vld [vmem:[%s2331_s1] sm:$0x1]  ;;  %v169_v19 = vld [vmem:[%s2331_s1 + $0x1] sm:$0x1]  ;;  %v1660_v26 = vld [vmem:[#allocation7 + $0x30] sm:$0xff]   ;;  %vm603_vm3 = vcmask 64512  }
  0xa1   :  { %413 = vmatpush1.bf16.msra.mxu1 %v1647_v7  ;;  %v170_v21 = vpack.c.bf16 %v168_v18, %v168_v18  ;;  %v171_v22 = vpack.c.bf16 %v169_v19, %v169_v19  ;;  %v1665_v24 = vld [vmem:[#allocation8 + $0x64] ss:$8 sps:$4 sm:$0xff]   ;;  %v1667_v29 = vld [vmem:[#allocation8 + $0x60] ss:$8 sps:$4 sm:$0xff]   ;;  %v1664_v30 = vld [vmem:[#allocation7 + $0x38] sm:$0xff]  }
  0xa2   :  { %414 = vmatprep.subr.bf16.mxu1 %v1649_v9  ;;  %v1670_v33 = vld [vmem:[#allocation8 + $0x70] ss:$8 sps:$4 sm:$0xff]   ;;  %v1944_v40 = vmov 1966171168   ;;  %v312_v43 = vld [vmem:[%s2341_s11] sm:$0x3] }
  0xa3   :  { %1481 = vmatpush3.bf16.msra.mxu0 %v1644_v8  ;;  %v201_v25 = vunpack.c.l.b16 %v171_v22  ;;  %v200_v27 = vunpack.c.l.b16 %v170_v21  ;;  %v2186_v34 = vld [vmem:[#allocation2] sm:$0xff]  ;;  %v2188_v35 = vld [vmem:[#allocation2 + $0x8] sm:$0xff]  ;;  %v470_v41 = vunpack.c.l.s4 %v1944_v40  ;;  %v317_v48 = vrot.slane %v312_v43, %v2198_v42  ;;  %v1367_v22 = vld [vmem:[#allocation5] ss:$0 sm:$0xff] }
  0xa4   :  { %1482 = vmatprep.subr.bf16.mxu0 %v1941_v0  ;;  %v1409_v37 = vpack.c.bf16 %v2188_v35, %v2186_v34  ;;  %v1336_v44 = vld [vmem:[%s2340_s10] ss:$0 sm:$0xff]  ;;  %v321_v56 = vrot.slane %v312_v43, %v320_v46 }
  0xa5   :  { %415 = vmatpush1.bf16.msra.mxu1 %v1651_v11  ;;  %v202_v28 = vrot.slane %v201_v25, 7  ;;  %v471_v45 = vunpack.c.0.s8 %v470_v41 }
  0xa6   :  { %416 = vmatprep.subr.bf16.mxu1 %v1653_v12  ;;  %v2220_v12 = vld [vmem:[%s2339_s9] sm:$0xf] }
  0xa7   :  { %1483 = vmatpush3.bf16.msra.mxu0 %v1648_v10  ;;  %v204_v32 = vsel %vm203_vm1, %v202_v28, %v200_v27  ;;  %v2207_v53 = vsub.s32 %v471_v45, %v315_v39 }
  0xa8   :  { %1484 = vmatprep.subr.bf16.mxu0 %v1941_v0  ;;  %v205_v36 = vpack.c.b16 %v204_v32, %v204_v32 }
  0xa9   :  { %417 = vmatpush1.bf16.msra.mxu1 %v1655_v13 }
  0xaa   :  { %418 = vmatprep.subr.bf16.mxu1 %v1657_v15 }
  0xab   :  { %1485 = vmatpush3.bf16.msra.mxu0 %v1652_v14 }
  0xac   :  { %1486 = vmatprep.subr.bf16.mxu0 %v1941_v0 }
  0xad   :  { %419 = vmatpush1.bf16.msra.mxu1 %v1659_v17 }
  0xae   :  { %420 = vmatprep.subr.bf16.mxu1 %v1661_v20 }
  0xaf   :  { %1487 = vmatpush3.bf16.msra.mxu0 %v1656_v16 }
  0xb0   :  { %1488 = vmatprep.subr.bf16.mxu0 %v1941_v0 }
  0xb1   :  { %421 = vmatpush1.bf16.msra.mxu1 %v1663_v23 }
  0xb2   :  { %422 = vmatprep.subr.bf16.mxu1 %v1665_v24 }
  0xb3   :  { %1489 = vmatpush3.bf16.msra.mxu0 %v1660_v26 }
  0xb4   :  { %1490 = vmatprep.subr.bf16.mxu0 %v1941_v0 }
  0xb5   :  { %423 = vmatpush1.bf16.msra.mxu1 %v1667_v29  ;;  %v1368_v29 = vld [vmem:[#allocation5 + $0x1] ss:$0 sm:$0xff] }
  0xb6   :  { %424 = vmatprep.subr.bf16.mxu1 %v1668_v31 }
  0xb7   :  { %1491 = vmatpush3.bf16.msra.mxu0 %v1664_v30 }
  0xb8   :  { %1520 = vmatprep.subr.bf16.mxu0 %v1941_v0 }
  0xb9   :  { %425 = vmatpush1.bf16.msra.mxu1 %v1670_v33 }
  0xba   :  { %1493 = vmatmul.mubr.bf16.vlgmr.msra.gmra.mrb[0].mxu0 %v205_v36  ;;  %1496 = vmatprep.subr.bf16.mxu1 %v1941_v0 }
  0xbb   :  { %1536 = vmatprep.mubr.msk.bf16.mxu0 %vm1942_vm0, %v1941_v0 }
  0xbc   :  { %443 = vmatmul.mubr.bf16.vlgmr.msra.gmra.mrb[0].mxu1 %v1409_v37 }
  0xbd   :  { %1498 = vmatprep.mubr.msk.bf16.mxu1 %vm1942_vm0, %v1941_v0 }
 0x18d   :  { %v289_v47 = vpop.f32.mrb[0].mxu0 }
 0x18e   :  { %v290_v49 = vadd.f32 %v1336_v44, %v289_v47  ;;  %v1494_v50 = vpop.f32.mrb[1].mxu0 }
 0x18f   :  { %v292_v51 = vpop.f32.mrb[2].mxu0  ;;  %v444_v55 = vpop.f32.mrb[0].mxu1 }
 0x190   :  { %v295_v52 = vmul.f32 0.35355338, %v290_v49  ;;  %v1495_v54 = vpop.f32.mrb[3].mxu0  ;;  %v445_v57 = vadd.f32 %v444_v55, %v317_v48  ;;  %v446_v58 = vpop.f32.mrb[1].mxu1  ;;  %v1671_v49 = vld [vmem:[#allocation10] sm:$0xff]  }
 0x191   :  { %v448_v60 = vpop.f32.mrb[2].mxu1  ;;  %v447_v17 = vadd.f32 %v446_v58, %v321_v56  ;;  %1521 = vmatpush3.bf16.msra.mxu0 %v1671_v49 }
 0x192   :  { %v467_v59 = vpack.c.bf16 %v295_v52, %v295_v52  ;;  %v1410_v61 = vpack.c.bf16 %v445_v57, %v445_v57  ;;  %v450_v62 = vpop.f32.mrb[3].mxu1  ;;  %v449_v11 = vadd.f32 %v448_v60, %v317_v48  ;;  %1522 = vmatprep.subr.bf16.mxu0 %v1941_v0  ;;  %v1673_v60 = vld [vmem:[#allocation10 + $0x10] sm:$0xff]  }
 0x193   :  { %v451_v1 = vadd.f32 %v450_v62, %v321_v56  ;;  %v1412_v19 = vpack.c.bf16 %v447_v17, %v447_v17  ;;  %v1675_v62 = vld [vmem:[#allocation10 + $0x20] sm:$0xff]  }
 0x194   :  { %v475_v63 = vrot.slane %v467_v59, %v2207_v53  ;;  %1497 = vmatpush3.bf16.xpose.msra.mxu1 %v1410_v61  ;;  %v1411_v16 = vpack.c.bf16 %v449_v11, %v449_v11  ;;  %v1672_v59 = vld [vmem:[#allocation10 + $0x8] sm:$0xff]   ;;  %v1674_v61 = vld [vmem:[#allocation10 + $0x18] sm:$0xff]  }
 0x195   :  { %v1413_v3 = vpack.c.bf16 %v451_v1, %v451_v1  ;;  %1502 = vmatprep.subr.bf16.mxu1 %v1941_v0  ;;  %v633_v21 = vsel %vm631_vm2, %v1412_v19, 0  ;;  %1523 = vmatpush3.bf16.msra.mxu0 %v1672_v59  ;;  %v1677_v1 = vld [vmem:[#allocation10 + $0x30] sm:$0xff]   ;;  %v1695_v59 = vld [vmem:[#allocation13] sm:$0xff]  }
 0x196   :  { %v482_v2 = vrot.slane %v475_v63, %v2207_v53  ;;  %1524 = vmatprep.subr.bf16.mxu0 %v1941_v0  ;;  %v1676_v63 = vld [vmem:[#allocation10 + $0x28] sm:$0xff]  }
 0x197   :  { %v2213_v6 = vsel %vm631_vm2, %v1413_v3, 0  ;;  %v1679_v3 = vld [vmem:[#allocation11] sm:$0xff]  }
 0x198   :  { %v484_v4 = vunpack.i.h.s16 %v482_v2  ;;  %v1366_v5 = vpack.i.b16 %v482_v2, %v482_v2  ;;  %v1678_v2 = vld [vmem:[#allocation10 + $0x38] sm:$0xff]  }
 0x199   :  { %1525 = vmatpush3.bf16.msra.mxu0 %v1673_v60  ;;  %v1696_v60 = vld [vmem:[#allocation13 + $0x8] sm:$0xff]  }
 0x19a   :  { %v486_v7 = vpack.i.b16 %v484_v4, %v484_v4  ;;  %v490_v8 = vrot.slane %v1366_v5, %v2198_v42  ;;  %1526 = vmatprep.subr.bf16.mxu0 %v1941_v0  ;;  %v1680_v4 = vld [vmem:[#allocation11 + $0x8] sm:$0xff]   ;;  %v1681_v5 = vld [vmem:[#allocation11 + $0x10] sm:$0xff]  }
 0x19c   :  { %v494_v9 = vrot.slane %v486_v7, %v2198_v42  ;;  %v496_v10 = vpack.i.b16 %v490_v8, %v490_v8  ;;  %v1683_v7 = vld [vmem:[#allocation11 + $0x20] sm:$0xff]   ;;  %v1684_v8 = vld [vmem:[#allocation11 + $0x28] sm:$0xff]  }
 0x19d   :  { %1527 = vmatpush3.bf16.msra.mxu0 %v1674_v61  ;;  %v1380_v61 = vld [vmem:[%s2343_s13] ss:$0 sm:$0xff] }
 0x19e   :  { %v501_v13 = vrot.slane %v496_v10, %v2198_v42  ;;  %v503_v14 = vpack.i.b16 %v494_v9, %v494_v9  ;;  %1528 = vmatprep.subr.bf16.mxu0 %v1941_v0  ;;  %v1685_v9 = vld [vmem:[#allocation11 + $0x30] sm:$0xff]   ;;  %v721_v10 = vunpack.c.l.bf16 %v2220_v12 }
 0x1a0   :  { %v509_v15 = vmul.bf16 %v501_v13, %v2220_v12  ;;  %v508_v18 = vrot.slane %v503_v14, %v2198_v42 }
 0x1a1   :  { %1529 = vmatpush3.bf16.msra.mxu0 %v1675_v62 }
 0x1a2   :  { %1499 = vmatmul.mubr.bf16.vlgmr.msra.gmra.mrb[4].mxu1 %v509_v15  ;;  %v510_v20 = vmul.bf16 %v508_v18, %v2220_v12  ;;  %1530 = vmatprep.subr.bf16.mxu0 %v1941_v0 }
 0x1a3   :  { %1503 = vmatpush3.bf16.xpose.msra.mxu1 %v1411_v16  ;;  %1504 = vmatprep.mubr.msk.bf16.mxu1 %vm1942_vm0, %v1941_v0 }
 0x1a4   :  { %1508 = vmatprep.subr.bf16.mxu1 %v1941_v0 }
 0x1a5   :  { %1531 = vmatpush3.bf16.msra.mxu0 %v1676_v63 }
 0x1a6   :  { %1532 = vmatprep.subr.bf16.mxu0 %v1941_v0 }
 0x1a9   :  { %1533 = vmatpush3.bf16.msra.mxu0 %v1677_v1 }
 0x1aa   :  { %1505 = vmatmul.mubr.bf16.vlgmr.msra.gmra.mrb[8].mxu1 %v510_v20  ;;  %1534 = vmatprep.subr.bf16.mxu0 %v1941_v0 }
 0x1ab   :  { %1509 = vmatpush3.bf16.msra.mxu1 %v633_v21  ;;  %1510 = vmatprep.mubr.msk.bf16.mxu1 %vm1942_vm0, %v1941_v0 }
 0x1ac   :  { %1514 = vmatprep.subr.bf16.mxu1 %v1941_v0 }
 0x1ad   :  { %1535 = vmatpush3.bf16.msra.mxu0 %v1678_v2 }
 0x1ae   :  { %1560 = vmatprep.subr.bf16.mxu0 %v1941_v0 }
 0x275   :  { %v557_v23 = vpop.f32.mrb[4].mxu1 }
 0x276   :  { %v558_v24 = vadd.f32 %v1367_v22, %v557_v23  ;;  %v1500_v25 = vpop.f32.mrb[5].mxu1 }
 0x277   :  { %v560_v26 = vpop.f32.mrb[6].mxu1 }
 0x278   :  { %v1501_v27 = vpop.f32.mrb[7].mxu1  ;;  %v604_v28 = vsel %vm603_vm3, %v558_v24, -inf }
 0x279   :  { %605 = vmax.xlane.f32.xlu0 %v604_v28 }
 0x27d   :  { %v597_v30 = vpop.f32.mrb[8].mxu1 }
 0x27e   :  { %v598_v31 = vadd.f32 %v1368_v29, %v597_v30  ;;  %v1506_v32 = vpop.f32.mrb[9].mxu1 }
 0x27f   :  { %v600_v33 = vpop.f32.mrb[10].mxu1 }
 0x280   :  { %v1507_v36 = vpop.f32.mrb[11].mxu1  ;;  %v607_v37 = vsel %vm603_vm3, %v598_v31, -inf }
 0x281   :  { %608 = vmax.xlane.f32.xlu0 %v607_v37 }
 0x306   :  { %v606_v38 = vpop.xlane.xlu0 %605 }
 0x307   :  { %v610_v39 = vsub.f32 %v558_v24, %v606_v38 }
 0x309   :  { %v612_v40 = vmul.f32 1.442695, %v610_v39 }
 0x30b   :  { %1703 = vpow2.f32 %v612_v40 }
 0x30e   :  { %v609_v41 = vpop.xlane.xlu0 %608 }
 0x30f   :  { %v611_v43 = vsub.f32 %v598_v31, %v609_v41  ;;  %v1686_v41 = vld [vmem:[#allocation11 + $0x38] sm:$0xff]  }
 0x311   :  { %v614_v44 = vmul.f32 1.442695, %v611_v43  ;;  %v1371_v43 = vld [vmem:[%s2342_s12] ss:$0 sm:$0xff] }
 0x313   :  { %1705 = vpow2.f32 %v614_v44 }
 0x315   :  { %v1704_v45 = vpop.eup %1703 }
 0x316   :  { %v616_v46 = vsel %vm603_vm3, %v1704_v45, 0.0 }
 0x317   :  { %617 = vadd.xlane.f32.xlu1 %v616_v46 }
 0x31d   :  { %v1706_v47 = vpop.eup %1705 }
 0x31e   :  { %v619_v48 = vsel %vm603_vm3, %v1706_v47, 0.0 }
 0x31f   :  { %620 = vadd.xlane.f32.xlu1 %v619_v48 }
 0x3a4   :  { %v618_v50 = vpop.xlane.xlu1 %617 }
 0x3a5   :  { %1707 = vrcp.f32 %v618_v50  ;;  %v1687_v50 = vld [vmem:[#allocation14] sm:$0xff]  }
 0x3ac   :  { %v621_v51 = vpop.xlane.xlu1 %620 }
 0x3ad   :  { %1709 = vrcp.f32 %v621_v51  ;;  %v1688_v51 = vld [vmem:[#allocation14 + $0x8] sm:$0xff]  }
 0x3af   :  { %v1708_v52 = vpop.eup %1707 }
 0x3b0   :  { %v624_v54 = vmul.f32 %v1708_v52, %v1704_v45  ;;  %v1689_v52 = vld [vmem:[#allocation14 + $0x10] sm:$0xff]  }
 0x3b2   :  { %v626_v55 = vpack.c.bf16 %v624_v54, %v624_v54  ;;  %v1690_v54 = vld [vmem:[#allocation14 + $0x18] sm:$0xff]  }
 0x3b4   :  { %1511 = vmatmul.mubr.msk.bf16.vlgmr.msra.gmra.mrb[12].mxu1 %vm603_vm3, %v626_v55  ;;  %v1691_v55 = vld [vmem:[#allocation14 + $0x20] sm:$0xff]  }
 0x3b5   :  { %1515 = vmatpush3.bf16.msra.mxu1 %v2213_v6  ;;  %1516 = vmatprep.mubr.msk.bf16.mxu1 %vm1942_vm0, %v1941_v0  ;;  %v1682_v6 = vld [vmem:[#allocation11 + $0x18] sm:$0xff]  }
 0x3b6   :  { %1540 = vmatprep.subr.bf16.mxu1 %v1941_v0 }
 0x3b7   :  { %v1710_v56 = vpop.eup %1709 }
 0x3b8   :  { %v625_v57 = vmul.f32 %v1710_v56, %v1706_v47  ;;  %v1692_v56 = vld [vmem:[#allocation14 + $0x28] sm:$0xff]  }
 0x3ba   :  { %v627_v58 = vpack.c.bf16 %v625_v57, %v625_v57  ;;  %v1693_v57 = vld [vmem:[#allocation14 + $0x30] sm:$0xff]  }
 0x3bc   :  { %1517 = vmatmul.mubr.msk.bf16.vlgmr.msra.gmra.mrb[16].mxu1 %vm603_vm3, %v627_v58  ;;  %v1694_v58 = vld [vmem:[#allocation14 + $0x38] sm:$0xff]  }
 0x3bd   :  { %1556 = vmatprep.mubr.msk.bf16.mxu1 %vm1942_vm0, %v1941_v0  ;;  %1541 = vmatpush3.bf16.msra.mxu1 %v1679_v3 }
 0x3be   :  { %1542 = vmatprep.subr.bf16.mxu1 %v1941_v0 }
 0x3c1   :  { %1543 = vmatpush3.bf16.msra.mxu1 %v1680_v4 }
 0x3c2   :  { %1544 = vmatprep.subr.bf16.mxu1 %v1941_v0 }
 0x3c5   :  { %1545 = vmatpush3.bf16.msra.mxu1 %v1681_v5 }
 0x3c6   :  { %1546 = vmatprep.subr.bf16.mxu1 %v1941_v0 }
 0x3c9   :  { %1547 = vmatpush3.bf16.msra.mxu1 %v1682_v6 }
 0x3ca   :  { %1548 = vmatprep.subr.bf16.mxu1 %v1941_v0 }
 0x3cd   :  { %1549 = vmatpush3.bf16.msra.mxu1 %v1683_v7 }
 0x3ce   :  { %1550 = vmatprep.subr.bf16.mxu1 %v1941_v0 }
 0x3d1   :  { %1551 = vmatpush3.bf16.msra.mxu1 %v1684_v8 }
 0x3d2   :  { %1552 = vmatprep.subr.bf16.mxu1 %v1941_v0 }
 0x3d5   :  { %1553 = vmatpush3.bf16.msra.mxu1 %v1685_v9 }
 0x3d6   :  { %1554 = vmatprep.subr.bf16.mxu1 %v1941_v0 }
 0x3d9   :  { %1555 = vmatpush3.bf16.msra.mxu1 %v1686_v41 }
 0x3da   :  { %1580 = vmatprep.subr.bf16.mxu1 %v1941_v0 }
 0x487   :  { %v669_v11 = vpop.f32.mrb[12].mxu1 }
 0x488   :  { %v722_v13 = vmul.f32 %v721_v10, %v669_v11  ;;  %v1512_v14 = vpop.f32.mrb[13].mxu1 }
 0x489   :  { %v672_v15 = vpop.f32.mrb[14].mxu1 }
 0x48a   :  { %v724_v16 = vrot.slane %v722_v13, 4  ;;  %v1513_v17 = vpop.f32.mrb[15].mxu1  ;;  %v1697_v15 = vld [vmem:[#allocation13 + $0x10] sm:$0xff]  }
 0x48b   :  { %v1699_v17 = vld [vmem:[#allocation13 + $0x20] sm:$0xff]  }
 0x48c   :  { %v725_v18 = vadd.f32 %v724_v16, %v722_v13  ;;  %v1698_v16 = vld [vmem:[#allocation13 + $0x18] sm:$0xff]  }
 0x48e   :  { %v726_v19 = vrot.slane %v725_v18, 2 }
 0x48f   :  { %v715_v20 = vpop.f32.mrb[16].mxu1 }
 0x490   :  { %v727_v21 = vadd.f32 %v726_v19, %v725_v18  ;;  %v723_v22 = vmul.f32 %v721_v10, %v715_v20  ;;  %v1518_v23 = vpop.f32.mrb[17].mxu1  ;;  %v1700_v18 = vld [vmem:[#allocation13 + $0x28] sm:$0xff]   ;;  %v1701_v19 = vld [vmem:[#allocation13 + $0x30] sm:$0xff]   ;;  %v1702_v20 = vld [vmem:[#allocation13 + $0x38] sm:$0xff]  }
 0x491   :  { %v718_v24 = vpop.f32.mrb[18].mxu1 }
 0x492   :  { %v730_v25 = vrot.slane %v723_v22, 4  ;;  %v1519_v26 = vpop.f32.mrb[19].mxu1  ;;  %v728_v27 = vrot.slane %v727_v21, 1 }
 0x494   :  { %v731_v28 = vadd.f32 %v730_v25, %v723_v22  ;;  %v729_v30 = vadd.f32 %v728_v27, %v727_v21  ;;  %v1389_v21 = vld [vmem:[%s2345_s15] ss:$0 sm:$0xff] }
 0x496   :  { %v732_v29 = vrot.slane %v731_v28, 2  ;;  %v736_v32 = vpack.c.bf16 %v729_v30, %v729_v30 }
 0x498   :  { %v733_v12 = vadd.f32 %v732_v29, %v731_v28  ;;  %v763_v37 = vunpack.c.l.b16 %v736_v32 }
 0x49a   :  { %v734_v31 = vrot.slane %v733_v12, 1 }
 0x49c   :  { %v735_v33 = vadd.f32 %v734_v31, %v733_v12 }
 0x49e   :  { %v737_v36 = vpack.c.bf16 %v735_v33, %v735_v33 }
 0x4a0   :  { %v764_v38 = vunpack.c.l.b16 %v737_v36  ;;  %v166_v36 = vpack.c.bf16 %v2186_v34, %v2186_v34 }
 0x4a2   :  { %v765_v39 = vsel %vm203_vm1, %v764_v38, %v763_v37  ;;  %v167_v37 = vpack.c.bf16 %v2188_v35, %v2188_v35 }
 0x4a3   :  { %v766_v40 = vpack.c.b16 %v765_v39, %v765_v39 }
 0x4a5   :  { %1537 = vmatmul.mubr.bf16.vlgmr.msra.gmra.mrb[4].mxu0 %v766_v40 }
 0x4a6   :  { %1576 = vmatprep.mubr.msk.bf16.mxu0 %vm1942_vm0, %v1941_v0  ;;  %1561 = vmatpush3.bf16.msra.mxu0 %v1687_v50 }
 0x4a7   :  { %1562 = vmatprep.subr.bf16.mxu0 %v1941_v0 }
 0x4aa   :  { %1563 = vmatpush3.bf16.msra.mxu0 %v1688_v51 }
 0x4ab   :  { %1564 = vmatprep.subr.bf16.mxu0 %v1941_v0 }
 0x4ae   :  { %1565 = vmatpush3.bf16.msra.mxu0 %v1689_v52 }
 0x4af   :  { %1566 = vmatprep.subr.bf16.mxu0 %v1941_v0 }
 0x4b2   :  { %1567 = vmatpush3.bf16.msra.mxu0 %v1690_v54 }
 0x4b3   :  { %1568 = vmatprep.subr.bf16.mxu0 %v1941_v0 }
 0x4b6   :  { %1569 = vmatpush3.bf16.msra.mxu0 %v1691_v55 }
 0x4b7   :  { %1570 = vmatprep.subr.bf16.mxu0 %v1941_v0 }
 0x4ba   :  { %1571 = vmatpush3.bf16.msra.mxu0 %v1692_v56 }
 0x4bb   :  { %1572 = vmatprep.subr.bf16.mxu0 %v1941_v0 }
 0x4be   :  { %1573 = vmatpush3.bf16.msra.mxu0 %v1693_v57 }
 0x4bf   :  { %1574 = vmatprep.subr.bf16.mxu0 %v1941_v0 }
 0x4c2   :  { %1575 = vmatpush3.bf16.msra.mxu0 %v1694_v58 }
 0x4c3   :  { %1600 = vmatprep.subr.bf16.mxu0 %v1941_v0 }
 0x578   :  { %v850_v44 = vpop.f32.mrb[4].mxu0 }
 0x579   :  { %v851_v45 = vadd.f32 %v1371_v43, %v850_v44  ;;  %v1538_v46 = vpop.f32.mrb[5].mxu0  ;;  %v1399_v44 = vld [vmem:[%s2344_s14] ss:$0 sm:$0xff]  ;;  %s1945_s14 = smov [#allocation16]  }
 0x57a   :  { %v853_v47 = vpop.f32.mrb[6].mxu0  ;;  %s1320_s18 = sshll.u32 %s1945_s14, 4  ;;  %s1321_s18 = int_to_ptr.vmem [resolvable:$true] %s1320_s18 }
 0x57b   :  { %v856_v48 = vpack.c.bf16 %v851_v45, %v851_v45  ;;  %v1539_v49 = vpop.f32.mrb[7].mxu0  ;;  %s1893_s4 = scalar_lea.vmem %s1321_s18, 256  ;;  %p1898_p9 = scmp.lt.s32.totalorder %s1321_s18, %s1321_s18 }
 0x57c   :  { %p1894_p8 = scmp.ne.s32.totalorder %s1321_s18, %s1893_s4  ;;  %p1899_p10 = scmp.lt.s32.totalorder %s1893_s4, %s1893_s4 }
 0x57d   :  { %1557 = vmatmul.mubr.bf16.vlgmr.msra.gmra.mrb[20].mxu1 %v856_v48 }
 0x57e   :  { %1596 = vmatprep.mubr.msk.bf16.mxu1 %vm1942_vm0, %v1941_v0  ;;  %1581 = vmatpush3.bf16.msra.mxu1 %v1695_v59  ;;  %p1900_p11 = por %p1899_p10, %p1898_p9 }
 0x57f   :  { %1582 = vmatprep.subr.bf16.mxu1 %v1941_v0 }
 0x580   :  { %p1901_p12 = pnand %p1900_p11, %p1894_p8 }
 0x582   :  { %1583 = vmatpush3.bf16.msra.mxu1 %v1696_v60 }
 0x583   :  { %1584 = vmatprep.subr.bf16.mxu1 %v1941_v0 }
 0x586   :  { %1585 = vmatpush3.bf16.msra.mxu1 %v1697_v15 }
 0x587   :  { %1586 = vmatprep.subr.bf16.mxu1 %v1941_v0 }
 0x58a   :  { %1587 = vmatpush3.bf16.msra.mxu1 %v1698_v16 }
 0x58b   :  { %1588 = vmatprep.subr.bf16.mxu1 %v1941_v0 }
 0x58e   :  { %1589 = vmatpush3.bf16.msra.mxu1 %v1699_v17 }
 0x58f   :  { %1590 = vmatprep.subr.bf16.mxu1 %v1941_v0 }
 0x592   :  { %1591 = vmatpush3.bf16.msra.mxu1 %v1700_v18 }
 0x593   :  { %1592 = vmatprep.subr.bf16.mxu1 %v1941_v0 }
 0x596   :  { %1593 = vmatpush3.bf16.msra.mxu1 %v1701_v19 }
 0x597   :  { %1594 = vmatprep.subr.bf16.mxu1 %v1941_v0 }
 0x59a   :  { %1595 = vmatpush3.bf16.msra.mxu1 %v1702_v20 }
 0x650   :  { %v962_v62 = vpop.f32.mrb[20].mxu1 }
 0x651   :  { %v963_v63 = vadd.f32 %v1380_v61, %v962_v62  ;;  %v1558_v1 = vpop.f32.mrb[21].mxu1 }
 0x652   :  { %v965_v2 = vpop.f32.mrb[22].mxu1 }
 0x653   :  { %v968_v3 = vmul.f32 %v963_v63, %v963_v63  ;;  %v1559_v4 = vpop.f32.mrb[23].mxu1 }
 0x655   :  { %v969_v5 = vmul.f32 %v968_v3, %v963_v63 }
 0x657   :  { %v970_v6 = vmul.f32 0.044715, %v969_v5 }
 0x659   :  { %v971_v7 = vadd.f32 %v970_v6, %v963_v63 }
 0x65b   :  { %v972_v8 = vmul.f32 0.7978846, %v971_v7 }
 0x65d   :  { %1711 = vtanh.f32 %v972_v8 }
 0x667   :  { %v1712_v9 = vpop.eup %1711 }
 0x668   :  { %v974_v10 = vadd.f32 1.0, %v1712_v9 }
 0x66a   :  { %v975_v11 = vmul.f32 0.5, %v974_v10 }
 0x66c   :  { %v976_v13 = vmul.f32 %v975_v11, %v963_v63 }
 0x66e   :  { %v977_v14 = vpack.c.bf16 %v976_v13, %v976_v13 }
 0x670   :  { %1577 = vmatmul.mubr.bf16.vlgmr.msra.gmra.mrb[8].mxu0 %v977_v14 }
 0x671   :  { %1601 = vmatpush3.bf16.msra.mxu0 %v1687_v50  ;;  %1616 = vmatprep.mubr.msk.bf16.mxu0 %vm1942_vm0, %v1941_v0 }
 0x672   :  { %1602 = vmatprep.subr.bf16.mxu0 %v1941_v0 }
 0x675   :  { %1603 = vmatpush3.bf16.msra.mxu0 %v1688_v51 }
 0x676   :  { %1604 = vmatprep.subr.bf16.mxu0 %v1941_v0 }
 0x679   :  { %1605 = vmatpush3.bf16.msra.mxu0 %v1689_v52 }
 0x67a   :  { %1606 = vmatprep.subr.bf16.mxu0 %v1941_v0 }
 0x67d   :  { %1607 = vmatpush3.bf16.msra.mxu0 %v1690_v54 }
 0x67e   :  { %1608 = vmatprep.subr.bf16.mxu0 %v1941_v0 }
 0x681   :  { %1609 = vmatpush3.bf16.msra.mxu0 %v1691_v55 }
 0x682   :  { %1610 = vmatprep.subr.bf16.mxu0 %v1941_v0 }
 0x685   :  { %1611 = vmatpush3.bf16.msra.mxu0 %v1692_v56 }
 0x686   :  { %1612 = vmatprep.subr.bf16.mxu0 %v1941_v0 }
 0x689   :  { %1613 = vmatpush3.bf16.msra.mxu0 %v1693_v57 }
 0x68a   :  { %1614 = vmatprep.subr.bf16.mxu0 %v1941_v0 }
 0x68d   :  { %1615 = vmatpush3.bf16.msra.mxu0 %v1694_v58 }
 0x743   :  { %v1083_v22 = vpop.f32.mrb[8].mxu0 }
 0x744   :  { %v1084_v23 = vadd.f32 %v1389_v21, %v1083_v22  ;;  %v1578_v24 = vpop.f32.mrb[9].mxu0 }
 0x745   :  { %v1086_v25 = vpop.f32.mrb[10].mxu0 }
 0x746   :  { %v1089_v26 = vpack.c.bf16 %v1084_v23, %v1084_v23  ;;  %v1579_v27 = vpop.f32.mrb[11].mxu0 }
 0x748   :  { %v1097_v28 = vrot.slane %v1089_v26, %v2207_v53 }
 0x74a   :  { %v1104_v29 = vrot.slane %v1097_v28, %v2207_v53 }
 0x74c   :  { %v1106_v30 = vunpack.i.h.s16 %v1104_v29  ;;  %v1398_v12 = vpack.i.b16 %v1104_v29, %v1104_v29 }
 0x74e   :  { %v1108_v31 = vpack.i.b16 %v1106_v30, %v1106_v30  ;;  %v1112_v0 = vrot.slane %v1398_v12, %v2198_v42 }
 0x750   :  { %v1116_v32 = vrot.slane %v1108_v31, %v2198_v42  ;;  %v1118_v33 = vpack.i.b16 %v1112_v0, %v1112_v0 }
 0x752   :  { %v1125_v38 = vpack.i.b16 %v1116_v32, %v1116_v32  ;;  %v1123_v39 = vrot.slane %v1118_v33, %v2198_v42 }
 0x754   :  { %v1130_v40 = vrot.slane %v1125_v38, %v2198_v42  ;;  %v1131_v53 = vadd.bf16 %v1123_v39, %v166_v36 }
 0x756   :  { %v1132_v41 = vadd.bf16 %v1130_v40, %v167_v37 }
 0x758   :  { %v1400_v43 = vcombine.low %v1131_v53, %v1132_v41 }
 0x75a   :  { %1597 = vmatmul.mubr.bf16.vlgmr.msra.gmra.mrb[24].mxu1 %v1400_v43 }
 0x82d   :  { %v1244_v45 = vpop.f32.mrb[24].mxu1 }
 0x82e   :  { %v1245_v46 = vadd.f32 %v1399_v44, %v1244_v45  ;;  %v1598_v47 = vpop.f32.mrb[25].mxu1 }
 0x82f   :  { %v1247_v48 = vpop.f32.mrb[26].mxu1 }
 0x830   :  { %v1251_v49 = vmul.f32 %v1245_v46, %v1245_v46  ;;  %v1248_v50 = vadd.f32 %v1399_v44, %v1247_v48  ;;  %v1599_v51 = vpop.f32.mrb[27].mxu1 }
 0x832   :  { %v1253_v52 = vmul.f32 %v1251_v49, %v1245_v46  ;;  %v1252_v54 = vmul.f32 %v1248_v50, %v1248_v50 }
 0x834   :  { %v1255_v55 = vmul.f32 0.044715, %v1253_v52  ;;  %v1254_v56 = vmul.f32 %v1252_v54, %v1248_v50 }
 0x836   :  { %v1257_v42 = vadd.f32 %v1255_v55, %v1245_v46  ;;  %v1256_v57 = vmul.f32 0.044715, %v1254_v56 }
 0x838   :  { %v1259_v58 = vmul.f32 0.7978846, %v1257_v42  ;;  %v1258_v59 = vadd.f32 %v1256_v57, %v1248_v50 }
 0x83a   :  { %1713 = vtanh.f32 %v1259_v58  ;;  %v1260_v60 = vmul.f32 0.7978846, %v1258_v59 }
 0x83c   :  { %1715 = vtanh.f32 %v1260_v60 }
 0x844   :  { %v1714_v61 = vpop.eup %1713 }
 0x845   :  { %v1263_v62 = vadd.f32 1.0, %v1714_v61 }
 0x846   :  { %v1716_v63 = vpop.eup %1715 }
 0x847   :  { %v1265_v1 = vmul.f32 0.5, %v1263_v62  ;;  %v1264_v2 = vadd.f32 1.0, %v1716_v63 }
 0x849   :  { %v1266_v3 = vmul.f32 0.5, %v1264_v2  ;;  %v1267_v4 = vmul.f32 %v1265_v1, %v1245_v46 }
 0x84b   :  { %v1268_v5 = vmul.f32 %v1266_v3, %v1248_v50 }
 0x84d   :  { %v1269_v6 = vpack.c.bf16 %v1268_v5, %v1267_v4 }
 0x84f   :  { %1617 = vmatmul.mubr.bf16.vlgmr.msra.gmra.mrb[12].mxu0 %v1269_v6 }
 0x922   :  { %v1304_v7 = vpop.f32.mrb[12].mxu0 }
 0x923   :  { %v1305_v8 = vadd.f32 %v1389_v21, %v1304_v7  ;;  %v1618_v9 = vpop.f32.mrb[13].mxu0 }
 0x924   :  { %v1307_v10 = vpop.f32.mrb[14].mxu0 }
 0x925   :  { %v1311_v11 = vadd.f32 %v1305_v8, %v2186_v34  ;;  %v1308_v13 = vadd.f32 %v1389_v21, %v1307_v10  ;;  %v1619_v14 = vpop.f32.mrb[15].mxu0 }
 0x927   :  { %1313 = vst [vmem:[#allocation16] sm:$0xff] %v1311_v11  ;;  %v1312_v15 = vadd.f32 %v1308_v13, %v2188_v35 }
 0x929   :  { %1314 = vst [vmem:[#allocation16 + $0x8] sm:$0xff] %v1312_v15 }
 0x92a   :  { %1904 = shalt.err (!%p1901_p12)
}
 0x92b   :  { %s1905_s20 = scalar_lea.hbm %s2346_s16, 256 }
 0x92c   :  { %p1906_p13 = scmp.ne.s32.totalorder %s2346_s16, %s1905_s20  ;;  %p1909_p0 = scmp.lt.u32.totalorder %s1905_s20, %s2346_s16 }
 0x92e   :  { %p1911_p1 = pnand %p1909_p0, %p1906_p13 }
 0x930   :  { %1914 = shalt.err (!%p1911_p1)
}
 0x931   :  { %1326 = dma.vmem_to_hbm [thread:$0]  %s1321_s18, 256, %s2346_s16, [#allocation4], %s1931_s2, %s1931_s2, %s1932_s22  }
 0x932   :  { %1925 = dma.done.wait [#allocation4], 256  }
 0x933   :  { %1926 = vsyncadd [#allocation4], 4294967040 }
 0x934   :  { %1330 = vsyncpa [#allocation3], 1 }
 0x935   :  { %1331 = vsyncpa [#allocation6], 1 }
 0x936   :  { %1332 = vsyncpa [#allocation9], 1 }
 0x937   :  { %1333 = vsyncpa [#allocation12], 1 }
 0x938   :  { %1334 = vsyncpa [#allocation15], 1 }
 0x939   :  { %1335 = vsyncpa [#allocation4], 1 }

</bundles_post_ra>
